<compile_context>
chip_gen: v5e
topology: v5e:2x2
jax: 0.10.0
libtpu: 0.0.40
codegen_flags: <defaults>
</compile_context>

<pallas_src>
import numpy as np
import jax
import jax.numpy as jnp
from jax.experimental import pallas as pl
from jax.experimental.pallas import tpu as pltpu

# ---- configuration (small shapes consistent with the module structure) ----
SIGNAL_DIM = 16          # -> linear input is 2*signal_dim = 32
N_FILTERS = 8
N_LAYERS = 3
INNER_DIM = 128          # L, the lane axis (per batch segment)
KERNEL_SIZE = 3
UPSAMPLING = 8
KERNEL_OUT = 25
OUT_PADDING = 1
FR_SIZE = INNER_DIM * UPSAMPLING
BN_EPS = 1e-5
BATCH = 2

TWO_S = 2 * SIGNAL_DIM
TCONV_PAD = (KERNEL_OUT - UPSAMPLING + 1) // 2      # = 9
# Polyphase decomposition of the transposed conv:
#   out[b, 8*m + r] = sum_d sum_c x[b, c, m - d] * w_t[c, 0, 8*d + r + 9]
# For stride=8, K=25, pad=9 the only contributing offsets d = m - l are:
TCONV_DS = (-2, -1, 0, 1)

F = N_FILTERS
L = INNER_DIM
B = BATCH
BL = B * L               # 256 lanes: [batch0 | batch1]


def _fr_kernel(inp_ref, wlin_ref, wconv_ref, gamma_ref, beta_ref, wdt_ref, out_ref):
    # ---- in_layer: 2S scalar*vreg FMAs per batch (no MXU, no relayout) ----
    # x[f, b*L + l] = sum_s inp[b, s] * W[f*L + l, s], with wlin pre-packed as (2S, F, L).
    accs = [None] * B
    for s in range(TWO_S):
        slab = wlin_ref[s]                               # (F, L) f32, one vreg
        for b in range(B):
            term = inp_ref[b * TWO_S + s] * slab          # SMEM scalar broadcast * vreg
            accs[b] = term if accs[b] is None else accs[b] + term
    x = jnp.concatenate(accs, axis=1)                     # (F, B*L) f32

    # ---- hoisted lane masks (position within each length-L batch segment) ----
    col_mod = jax.lax.broadcasted_iota(jnp.int32, (F, BL), 1) % L
    seg_first = col_mod == 0
    seg_last = col_mod == L - 1

    wconv = wconv_ref[...]                                # (N_LAYERS, F, 3F) bf16
    gamma = gamma_ref[...]                                # (N_LAYERS, F, 1)  f32
    beta = beta_ref[...]                                  # (N_LAYERS, F, 1)  f32

    inv_bl = 1.0 / float(BL)
    roll_prev = (BL - L + 1) % BL                         # global roll giving x[(l-1) mod L]
    # ---- conv stack: 3 x [circular 'same' Conv1d -> BatchNorm1d (batch stats) -> ReLU]
    for n in range(N_LAYERS):
        # per-segment circular shift by +1 (tap t=0): x[c, (l-1) mod L]
        sp1 = jnp.where(seg_first, pltpu.roll(x, roll_prev, 1), pltpu.roll(x, 1, 1))
        # per-segment circular shift by -1 (tap t=2): x[c, (l+1) mod L]
        sm1 = jnp.where(seg_last, pltpu.roll(x, L - 1, 1), pltpu.roll(x, BL - 1, 1))
        stack = jnp.concatenate([sp1, x, sm1], axis=0).astype(jnp.bfloat16)   # (3F, B*L)
        z = jnp.dot(wconv[n], stack, preferred_element_type=jnp.float32)      # (F, B*L) f32

        # BatchNorm1d training-mode stats over (batch, length), one pass (independent
        # reductions), biased variance. f32 throughout.
        s1 = jnp.sum(z, axis=1, keepdims=True)            # (F, 1)
        s2 = jnp.sum(z * z, axis=1, keepdims=True)        # (F, 1)
        mean = s1 * inv_bl
        var = jnp.maximum(s2 * inv_bl - mean * mean, 0.0)
        scale = gamma[n] * jax.lax.rsqrt(var + BN_EPS)
        shift = beta[n] - mean * scale
        x = jnp.maximum(z * scale + shift, 0.0)

    # ---- out_layer: ConvTranspose1d via polyphase, 4 offsets fused into 1 matmul ----
    parts = []
    for d in TCONV_DS:
        if d == 0:
            parts.append(x)
        else:
            rolled = pltpu.roll(x, d % BL, 1)              # x[c, (p - d) mod BL]
            if d > 0:
                parts.append(jnp.where(col_mod >= d, rolled, 0.0))       # zero-pad left
            else:
                parts.append(jnp.where(col_mod < L + d, rolled, 0.0))    # zero-pad right
    stack_t = jnp.concatenate(parts, axis=0).astype(jnp.bfloat16)         # (4F, B*L)
    # phases[r, b*L + m] = sum_{d,c} w_t[c, 8d + r + 9] * x[c, m - d]
    phases = jnp.dot(wdt_ref[...], stack_t, preferred_element_type=jnp.float32)  # (UPS, B*L)

    # ---- fold the polyphase interleave into the kernel: fr[b, 8m + r] = phases[r, b*L + m]
    # Per-batch (8,128) -> (128,8) XLU transpose; wrapper reshape is a free metadata op.
    for b in range(B):
        out_ref[b] = jnp.transpose(phases[:, b * L:(b + 1) * L])   # (L, UPSAMPLING)


@jax.jit
def frequency_representation_forward(inp_flat, wlin, wconv, gamma, beta, wdt):
    out = pl.pallas_call(
        _fr_kernel,
        out_shape=jax.ShapeDtypeStruct((B, L, UPSAMPLING), jnp.float32),
        in_specs=[
            pl.BlockSpec(memory_space=pltpu.MemorySpace.SMEM),   # inp scalars
            pl.BlockSpec(memory_space=pltpu.MemorySpace.VMEM),   # wlin (2S, F, L)
            pl.BlockSpec(memory_space=pltpu.MemorySpace.VMEM),   # wconv (nl, F, 3F) bf16
            pl.BlockSpec(memory_space=pltpu.MemorySpace.VMEM),   # gamma
            pl.BlockSpec(memory_space=pltpu.MemorySpace.VMEM),   # beta
            pl.BlockSpec(memory_space=pltpu.MemorySpace.VMEM),   # wdt (UPS, 4F) bf16
        ],
        out_specs=pl.BlockSpec(memory_space=pltpu.MemorySpace.VMEM),
    )(inp_flat, wlin, wconv, gamma, beta, wdt)
    # (B, L, UPSAMPLING) -> (B, FR_SIZE): contiguous row-major merge, no data movement.
    return out.reshape(B, FR_SIZE)


def init_params(key):
    k1, k2, k3, k4, k5 = jax.random.split(key, 5)
    # Linear weight packed as (2S, F, L): wlin[s, f, l] == torch W[f*L + l, s]
    wlin = 0.1 * jax.random.normal(k1, (TWO_S, F, L), jnp.float32)
    # Conv1d weights in torch layout (layer, out_ch, in_ch, tap), packed so that
    # wconv[n, o, t*F + c] == torch w_n[o, c, t]  -> one (F, 3F) matmul LHS per layer.
    # Stored bf16: MXU-native operand (accumulation stays f32 in-kernel).
    wconv_raw = 0.2 * jax.random.normal(
        k2, (N_LAYERS, F, F, KERNEL_SIZE), jnp.float32)
    wconv = jnp.transpose(wconv_raw, (0, 1, 3, 2)).reshape(
        N_LAYERS, F, KERNEL_SIZE * F).astype(jnp.bfloat16)
    gamma = 1.0 + 0.1 * jax.random.normal(k3, (N_LAYERS, F, 1), jnp.float32)
    beta = 0.1 * jax.random.normal(k4, (N_LAYERS, F, 1), jnp.float32)
    # ConvTranspose1d weight: torch shape (in_ch=F, out_ch=1, K=25) -> here (F, K)
    w_tconv = 0.1 * jax.random.normal(k5, (F, KERNEL_OUT), jnp.float32)

    # Polyphase packing: wdt[r, di*F + c] = w_tconv[c, 8*d + r + 9] (0 if k out of range)
    wdt = np.zeros((UPSAMPLING, len(TCONV_DS) * F), np.float32)
    wt_np = np.asarray(w_tconv)
    for di, d in enumerate(TCONV_DS):
        for r in range(UPSAMPLING):
            k = UPSAMPLING * d + r + TCONV_PAD
            if 0 <= k < KERNEL_OUT:
                wdt[r, di * F:(di + 1) * F] = wt_np[:, k]
    return wlin, wconv, gamma, beta, jnp.asarray(wdt, jnp.bfloat16)


if __name__ == "__main__":
    key = jax.random.PRNGKey(0)
    kx, kp = jax.random.split(key)

    # Input matches the PyTorch module convention: (batch, 2, signal_dim), flattened inside.
    x = jax.random.normal(kx, (BATCH, 2, SIGNAL_DIM), jnp.float32)
    params = init_params(kp)

    # 'inp.view(bsz, -1)' flattened once more to 1D for SMEM scalar access: [b*2S + s].
    inp_flat = x.reshape(-1)                       # (B * 2*signal_dim,)
    out = frequency_representation_forward(inp_flat, *params)
    out = jax.block_until_ready(out)

    assert out.shape == (BATCH, FR_SIZE), out.shape
    assert bool(jnp.all(jnp.isfinite(out)))
    print("KERNEL_OK")
</pallas_src>

<mosaic_0001>
module attributes {stable_mosaic.version = 11 : i64} {
  func.func @_fr_kernel(%arg0: memref<64xf32, #tpu.memory_space<smem>>, %arg1: memref<32x8x128xf32, #tpu.memory_space<vmem>>, %arg2: memref<3x8x24xbf16, #tpu.memory_space<vmem>>, %arg3: memref<3x8x1xf32, #tpu.memory_space<vmem>>, %arg4: memref<3x8x1xf32, #tpu.memory_space<vmem>>, %arg5: memref<8x32xbf16, #tpu.memory_space<vmem>>, %arg6: memref<2x128x8xf32, #tpu.memory_space<vmem>>) attributes {dimension_semantics = [], scalar_prefetch = 0 : i64, scratch_operands = 0 : i64, tpu.core_type = #tpu.core_type<tc>} {
    %c0 = arith.constant 0 : index
    %c0_0 = arith.constant 0 : index
    %c0_1 = arith.constant 0 : index
    %0 = vector.load %arg1[%c0, %c0_0, %c0_1] : memref<32x8x128xf32, #tpu.memory_space<vmem>>, vector<1x8x128xf32>
    %1 = vector.shape_cast %0 : vector<1x8x128xf32> to vector<8x128xf32>
    %c0_2 = arith.constant 0 : index
    %2 = memref.load %arg0[%c0_2] : memref<64xf32, #tpu.memory_space<smem>>
    %3 = vector.broadcast %2 : f32 to vector<8x128xf32>
    %4 = arith.mulf %3, %1 : vector<8x128xf32>
    %c32 = arith.constant 32 : index
    %5 = memref.load %arg0[%c32] : memref<64xf32, #tpu.memory_space<smem>>
    %6 = vector.broadcast %5 : f32 to vector<8x128xf32>
    %7 = arith.mulf %6, %1 : vector<8x128xf32>
    %c1 = arith.constant 1 : index
    %c0_3 = arith.constant 0 : index
    %c0_4 = arith.constant 0 : index
    %8 = vector.load %arg1[%c1, %c0_3, %c0_4] : memref<32x8x128xf32, #tpu.memory_space<vmem>>, vector<1x8x128xf32>
    %9 = vector.shape_cast %8 : vector<1x8x128xf32> to vector<8x128xf32>
    %c1_5 = arith.constant 1 : index
    %10 = memref.load %arg0[%c1_5] : memref<64xf32, #tpu.memory_space<smem>>
    %11 = vector.broadcast %10 : f32 to vector<8x128xf32>
    %12 = arith.mulf %11, %9 : vector<8x128xf32>
    %13 = arith.addf %4, %12 : vector<8x128xf32>
    %c33 = arith.constant 33 : index
    %14 = memref.load %arg0[%c33] : memref<64xf32, #tpu.memory_space<smem>>
    %15 = vector.broadcast %14 : f32 to vector<8x128xf32>
    %16 = arith.mulf %15, %9 : vector<8x128xf32>
    %17 = arith.addf %7, %16 : vector<8x128xf32>
    %c2 = arith.constant 2 : index
    %c0_6 = arith.constant 0 : index
    %c0_7 = arith.constant 0 : index
    %18 = vector.load %arg1[%c2, %c0_6, %c0_7] : memref<32x8x128xf32, #tpu.memory_space<vmem>>, vector<1x8x128xf32>
    %19 = vector.shape_cast %18 : vector<1x8x128xf32> to vector<8x128xf32>
    %c2_8 = arith.constant 2 : index
    %20 = memref.load %arg0[%c2_8] : memref<64xf32, #tpu.memory_space<smem>>
    %21 = vector.broadcast %20 : f32 to vector<8x128xf32>
    %22 = arith.mulf %21, %19 : vector<8x128xf32>
    %23 = arith.addf %13, %22 : vector<8x128xf32>
    %c34 = arith.constant 34 : index
    %24 = memref.load %arg0[%c34] : memref<64xf32, #tpu.memory_space<smem>>
    %25 = vector.broadcast %24 : f32 to vector<8x128xf32>
    %26 = arith.mulf %25, %19 : vector<8x128xf32>
    %27 = arith.addf %17, %26 : vector<8x128xf32>
    %c3 = arith.constant 3 : index
    %c0_9 = arith.constant 0 : index
    %c0_10 = arith.constant 0 : index
    %28 = vector.load %arg1[%c3, %c0_9, %c0_10] : memref<32x8x128xf32, #tpu.memory_space<vmem>>, vector<1x8x128xf32>
    %29 = vector.shape_cast %28 : vector<1x8x128xf32> to vector<8x128xf32>
    %c3_11 = arith.constant 3 : index
    %30 = memref.load %arg0[%c3_11] : memref<64xf32, #tpu.memory_space<smem>>
    %31 = vector.broadcast %30 : f32 to vector<8x128xf32>
    %32 = arith.mulf %31, %29 : vector<8x128xf32>
    %33 = arith.addf %23, %32 : vector<8x128xf32>
    %c35 = arith.constant 35 : index
    %34 = memref.load %arg0[%c35] : memref<64xf32, #tpu.memory_space<smem>>
    %35 = vector.broadcast %34 : f32 to vector<8x128xf32>
    %36 = arith.mulf %35, %29 : vector<8x128xf32>
    %37 = arith.addf %27, %36 : vector<8x128xf32>
    %c4 = arith.constant 4 : index
    %c0_12 = arith.constant 0 : index
    %c0_13 = arith.constant 0 : index
    %38 = vector.load %arg1[%c4, %c0_12, %c0_13] : memref<32x8x128xf32, #tpu.memory_space<vmem>>, vector<1x8x128xf32>
    %39 = vector.shape_cast %38 : vector<1x8x128xf32> to vector<8x128xf32>
    %c4_14 = arith.constant 4 : index
    %40 = memref.load %arg0[%c4_14] : memref<64xf32, #tpu.memory_space<smem>>
    %41 = vector.broadcast %40 : f32 to vector<8x128xf32>
    %42 = arith.mulf %41, %39 : vector<8x128xf32>
    %43 = arith.addf %33, %42 : vector<8x128xf32>
    %c36 = arith.constant 36 : index
    %44 = memref.load %arg0[%c36] : memref<64xf32, #tpu.memory_space<smem>>
    %45 = vector.broadcast %44 : f32 to vector<8x128xf32>
    %46 = arith.mulf %45, %39 : vector<8x128xf32>
    %47 = arith.addf %37, %46 : vector<8x128xf32>
    %c5 = arith.constant 5 : index
    %c0_15 = arith.constant 0 : index
    %c0_16 = arith.constant 0 : index
    %48 = vector.load %arg1[%c5, %c0_15, %c0_16] : memref<32x8x128xf32, #tpu.memory_space<vmem>>, vector<1x8x128xf32>
    %49 = vector.shape_cast %48 : vector<1x8x128xf32> to vector<8x128xf32>
    %c5_17 = arith.constant 5 : index
    %50 = memref.load %arg0[%c5_17] : memref<64xf32, #tpu.memory_space<smem>>
    %51 = vector.broadcast %50 : f32 to vector<8x128xf32>
    %52 = arith.mulf %51, %49 : vector<8x128xf32>
    %53 = arith.addf %43, %52 : vector<8x128xf32>
    %c37 = arith.constant 37 : index
    %54 = memref.load %arg0[%c37] : memref<64xf32, #tpu.memory_space<smem>>
    %55 = vector.broadcast %54 : f32 to vector<8x128xf32>
    %56 = arith.mulf %55, %49 : vector<8x128xf32>
    %57 = arith.addf %47, %56 : vector<8x128xf32>
    %c6 = arith.constant 6 : index
    %c0_18 = arith.constant 0 : index
    %c0_19 = arith.constant 0 : index
    %58 = vector.load %arg1[%c6, %c0_18, %c0_19] : memref<32x8x128xf32, #tpu.memory_space<vmem>>, vector<1x8x128xf32>
    %59 = vector.shape_cast %58 : vector<1x8x128xf32> to vector<8x128xf32>
    %c6_20 = arith.constant 6 : index
    %60 = memref.load %arg0[%c6_20] : memref<64xf32, #tpu.memory_space<smem>>
    %61 = vector.broadcast %60 : f32 to vector<8x128xf32>
    %62 = arith.mulf %61, %59 : vector<8x128xf32>
    %63 = arith.addf %53, %62 : vector<8x128xf32>
    %c38 = arith.constant 38 : index
    %64 = memref.load %arg0[%c38] : memref<64xf32, #tpu.memory_space<smem>>
    %65 = vector.broadcast %64 : f32 to vector<8x128xf32>
    %66 = arith.mulf %65, %59 : vector<8x128xf32>
    %67 = arith.addf %57, %66 : vector<8x128xf32>
    %c7 = arith.constant 7 : index
    %c0_21 = arith.constant 0 : index
    %c0_22 = arith.constant 0 : index
    %68 = vector.load %arg1[%c7, %c0_21, %c0_22] : memref<32x8x128xf32, #tpu.memory_space<vmem>>, vector<1x8x128xf32>
    %69 = vector.shape_cast %68 : vector<1x8x128xf32> to vector<8x128xf32>
    %c7_23 = arith.constant 7 : index
    %70 = memref.load %arg0[%c7_23] : memref<64xf32, #tpu.memory_space<smem>>
    %71 = vector.broadcast %70 : f32 to vector<8x128xf32>
    %72 = arith.mulf %71, %69 : vector<8x128xf32>
    %73 = arith.addf %63, %72 : vector<8x128xf32>
    %c39 = arith.constant 39 : index
    %74 = memref.load %arg0[%c39] : memref<64xf32, #tpu.memory_space<smem>>
    %75 = vector.broadcast %74 : f32 to vector<8x128xf32>
    %76 = arith.mulf %75, %69 : vector<8x128xf32>
    %77 = arith.addf %67, %76 : vector<8x128xf32>
    %c8 = arith.constant 8 : index
    %c0_24 = arith.constant 0 : index
    %c0_25 = arith.constant 0 : index
    %78 = vector.load %arg1[%c8, %c0_24, %c0_25] : memref<32x8x128xf32, #tpu.memory_space<vmem>>, vector<1x8x128xf32>
    %79 = vector.shape_cast %78 : vector<1x8x128xf32> to vector<8x128xf32>
    %c8_26 = arith.constant 8 : index
    %80 = memref.load %arg0[%c8_26] : memref<64xf32, #tpu.memory_space<smem>>
    %81 = vector.broadcast %80 : f32 to vector<8x128xf32>
    %82 = arith.mulf %81, %79 : vector<8x128xf32>
    %83 = arith.addf %73, %82 : vector<8x128xf32>
    %c40 = arith.constant 40 : index
    %84 = memref.load %arg0[%c40] : memref<64xf32, #tpu.memory_space<smem>>
    %85 = vector.broadcast %84 : f32 to vector<8x128xf32>
    %86 = arith.mulf %85, %79 : vector<8x128xf32>
    %87 = arith.addf %77, %86 : vector<8x128xf32>
    %c9 = arith.constant 9 : index
    %c0_27 = arith.constant 0 : index
    %c0_28 = arith.constant 0 : index
    %88 = vector.load %arg1[%c9, %c0_27, %c0_28] : memref<32x8x128xf32, #tpu.memory_space<vmem>>, vector<1x8x128xf32>
    %89 = vector.shape_cast %88 : vector<1x8x128xf32> to vector<8x128xf32>
    %c9_29 = arith.constant 9 : index
    %90 = memref.load %arg0[%c9_29] : memref<64xf32, #tpu.memory_space<smem>>
    %91 = vector.broadcast %90 : f32 to vector<8x128xf32>
    %92 = arith.mulf %91, %89 : vector<8x128xf32>
    %93 = arith.addf %83, %92 : vector<8x128xf32>
    %c41 = arith.constant 41 : index
    %94 = memref.load %arg0[%c41] : memref<64xf32, #tpu.memory_space<smem>>
    %95 = vector.broadcast %94 : f32 to vector<8x128xf32>
    %96 = arith.mulf %95, %89 : vector<8x128xf32>
    %97 = arith.addf %87, %96 : vector<8x128xf32>
    %c10 = arith.constant 10 : index
    %c0_30 = arith.constant 0 : index
    %c0_31 = arith.constant 0 : index
    %98 = vector.load %arg1[%c10, %c0_30, %c0_31] : memref<32x8x128xf32, #tpu.memory_space<vmem>>, vector<1x8x128xf32>
    %99 = vector.shape_cast %98 : vector<1x8x128xf32> to vector<8x128xf32>
    %c10_32 = arith.constant 10 : index
    %100 = memref.load %arg0[%c10_32] : memref<64xf32, #tpu.memory_space<smem>>
    %101 = vector.broadcast %100 : f32 to vector<8x128xf32>
    %102 = arith.mulf %101, %99 : vector<8x128xf32>
    %103 = arith.addf %93, %102 : vector<8x128xf32>
    %c42 = arith.constant 42 : index
    %104 = memref.load %arg0[%c42] : memref<64xf32, #tpu.memory_space<smem>>
    %105 = vector.broadcast %104 : f32 to vector<8x128xf32>
    %106 = arith.mulf %105, %99 : vector<8x128xf32>
    %107 = arith.addf %97, %106 : vector<8x128xf32>
    %c11 = arith.constant 11 : index
    %c0_33 = arith.constant 0 : index
    %c0_34 = arith.constant 0 : index
    %108 = vector.load %arg1[%c11, %c0_33, %c0_34] : memref<32x8x128xf32, #tpu.memory_space<vmem>>, vector<1x8x128xf32>
    %109 = vector.shape_cast %108 : vector<1x8x128xf32> to vector<8x128xf32>
    %c11_35 = arith.constant 11 : index
    %110 = memref.load %arg0[%c11_35] : memref<64xf32, #tpu.memory_space<smem>>
    %111 = vector.broadcast %110 : f32 to vector<8x128xf32>
    %112 = arith.mulf %111, %109 : vector<8x128xf32>
    %113 = arith.addf %103, %112 : vector<8x128xf32>
    %c43 = arith.constant 43 : index
    %114 = memref.load %arg0[%c43] : memref<64xf32, #tpu.memory_space<smem>>
    %115 = vector.broadcast %114 : f32 to vector<8x128xf32>
    %116 = arith.mulf %115, %109 : vector<8x128xf32>
    %117 = arith.addf %107, %116 : vector<8x128xf32>
    %c12 = arith.constant 12 : index
    %c0_36 = arith.constant 0 : index
    %c0_37 = arith.constant 0 : index
    %118 = vector.load %arg1[%c12, %c0_36, %c0_37] : memref<32x8x128xf32, #tpu.memory_space<vmem>>, vector<1x8x128xf32>
    %119 = vector.shape_cast %118 : vector<1x8x128xf32> to vector<8x128xf32>
    %c12_38 = arith.constant 12 : index
    %120 = memref.load %arg0[%c12_38] : memref<64xf32, #tpu.memory_space<smem>>
    %121 = vector.broadcast %120 : f32 to vector<8x128xf32>
    %122 = arith.mulf %121, %119 : vector<8x128xf32>
    %123 = arith.addf %113, %122 : vector<8x128xf32>
    %c44 = arith.constant 44 : index
    %124 = memref.load %arg0[%c44] : memref<64xf32, #tpu.memory_space<smem>>
    %125 = vector.broadcast %124 : f32 to vector<8x128xf32>
    %126 = arith.mulf %125, %119 : vector<8x128xf32>
    %127 = arith.addf %117, %126 : vector<8x128xf32>
    %c13 = arith.constant 13 : index
    %c0_39 = arith.constant 0 : index
    %c0_40 = arith.constant 0 : index
    %128 = vector.load %arg1[%c13, %c0_39, %c0_40] : memref<32x8x128xf32, #tpu.memory_space<vmem>>, vector<1x8x128xf32>
    %129 = vector.shape_cast %128 : vector<1x8x128xf32> to vector<8x128xf32>
    %c13_41 = arith.constant 13 : index
    %130 = memref.load %arg0[%c13_41] : memref<64xf32, #tpu.memory_space<smem>>
    %131 = vector.broadcast %130 : f32 to vector<8x128xf32>
    %132 = arith.mulf %131, %129 : vector<8x128xf32>
    %133 = arith.addf %123, %132 : vector<8x128xf32>
    %c45 = arith.constant 45 : index
    %134 = memref.load %arg0[%c45] : memref<64xf32, #tpu.memory_space<smem>>
    %135 = vector.broadcast %134 : f32 to vector<8x128xf32>
    %136 = arith.mulf %135, %129 : vector<8x128xf32>
    %137 = arith.addf %127, %136 : vector<8x128xf32>
    %c14 = arith.constant 14 : index
    %c0_42 = arith.constant 0 : index
    %c0_43 = arith.constant 0 : index
    %138 = vector.load %arg1[%c14, %c0_42, %c0_43] : memref<32x8x128xf32, #tpu.memory_space<vmem>>, vector<1x8x128xf32>
    %139 = vector.shape_cast %138 : vector<1x8x128xf32> to vector<8x128xf32>
    %c14_44 = arith.constant 14 : index
    %140 = memref.load %arg0[%c14_44] : memref<64xf32, #tpu.memory_space<smem>>
    %141 = vector.broadcast %140 : f32 to vector<8x128xf32>
    %142 = arith.mulf %141, %139 : vector<8x128xf32>
    %143 = arith.addf %133, %142 : vector<8x128xf32>
    %c46 = arith.constant 46 : index
    %144 = memref.load %arg0[%c46] : memref<64xf32, #tpu.memory_space<smem>>
    %145 = vector.broadcast %144 : f32 to vector<8x128xf32>
    %146 = arith.mulf %145, %139 : vector<8x128xf32>
    %147 = arith.addf %137, %146 : vector<8x128xf32>
    %c15 = arith.constant 15 : index
    %c0_45 = arith.constant 0 : index
    %c0_46 = arith.constant 0 : index
    %148 = vector.load %arg1[%c15, %c0_45, %c0_46] : memref<32x8x128xf32, #tpu.memory_space<vmem>>, vector<1x8x128xf32>
    %149 = vector.shape_cast %148 : vector<1x8x128xf32> to vector<8x128xf32>
    %c15_47 = arith.constant 15 : index
    %150 = memref.load %arg0[%c15_47] : memref<64xf32, #tpu.memory_space<smem>>
    %151 = vector.broadcast %150 : f32 to vector<8x128xf32>
    %152 = arith.mulf %151, %149 : vector<8x128xf32>
    %153 = arith.addf %143, %152 : vector<8x128xf32>
    %c47 = arith.constant 47 : index
    %154 = memref.load %arg0[%c47] : memref<64xf32, #tpu.memory_space<smem>>
    %155 = vector.broadcast %154 : f32 to vector<8x128xf32>
    %156 = arith.mulf %155, %149 : vector<8x128xf32>
    %157 = arith.addf %147, %156 : vector<8x128xf32>
    %c16 = arith.constant 16 : index
    %c0_48 = arith.constant 0 : index
    %c0_49 = arith.constant 0 : index
    %158 = vector.load %arg1[%c16, %c0_48, %c0_49] : memref<32x8x128xf32, #tpu.memory_space<vmem>>, vector<1x8x128xf32>
    %159 = vector.shape_cast %158 : vector<1x8x128xf32> to vector<8x128xf32>
    %c16_50 = arith.constant 16 : index
    %160 = memref.load %arg0[%c16_50] : memref<64xf32, #tpu.memory_space<smem>>
    %161 = vector.broadcast %160 : f32 to vector<8x128xf32>
    %162 = arith.mulf %161, %159 : vector<8x128xf32>
    %163 = arith.addf %153, %162 : vector<8x128xf32>
    %c48 = arith.constant 48 : index
    %164 = memref.load %arg0[%c48] : memref<64xf32, #tpu.memory_space<smem>>
    %165 = vector.broadcast %164 : f32 to vector<8x128xf32>
    %166 = arith.mulf %165, %159 : vector<8x128xf32>
    %167 = arith.addf %157, %166 : vector<8x128xf32>
    %c17 = arith.constant 17 : index
    %c0_51 = arith.constant 0 : index
    %c0_52 = arith.constant 0 : index
    %168 = vector.load %arg1[%c17, %c0_51, %c0_52] : memref<32x8x128xf32, #tpu.memory_space<vmem>>, vector<1x8x128xf32>
    %169 = vector.shape_cast %168 : vector<1x8x128xf32> to vector<8x128xf32>
    %c17_53 = arith.constant 17 : index
    %170 = memref.load %arg0[%c17_53] : memref<64xf32, #tpu.memory_space<smem>>
    %171 = vector.broadcast %170 : f32 to vector<8x128xf32>
    %172 = arith.mulf %171, %169 : vector<8x128xf32>
    %173 = arith.addf %163, %172 : vector<8x128xf32>
    %c49 = arith.constant 49 : index
    %174 = memref.load %arg0[%c49] : memref<64xf32, #tpu.memory_space<smem>>
    %175 = vector.broadcast %174 : f32 to vector<8x128xf32>
    %176 = arith.mulf %175, %169 : vector<8x128xf32>
    %177 = arith.addf %167, %176 : vector<8x128xf32>
    %c18 = arith.constant 18 : index
    %c0_54 = arith.constant 0 : index
    %c0_55 = arith.constant 0 : index
    %178 = vector.load %arg1[%c18, %c0_54, %c0_55] : memref<32x8x128xf32, #tpu.memory_space<vmem>>, vector<1x8x128xf32>
    %179 = vector.shape_cast %178 : vector<1x8x128xf32> to vector<8x128xf32>
    %c18_56 = arith.constant 18 : index
    %180 = memref.load %arg0[%c18_56] : memref<64xf32, #tpu.memory_space<smem>>
    %181 = vector.broadcast %180 : f32 to vector<8x128xf32>
    %182 = arith.mulf %181, %179 : vector<8x128xf32>
    %183 = arith.addf %173, %182 : vector<8x128xf32>
    %c50 = arith.constant 50 : index
    %184 = memref.load %arg0[%c50] : memref<64xf32, #tpu.memory_space<smem>>
    %185 = vector.broadcast %184 : f32 to vector<8x128xf32>
    %186 = arith.mulf %185, %179 : vector<8x128xf32>
    %187 = arith.addf %177, %186 : vector<8x128xf32>
    %c19 = arith.constant 19 : index
    %c0_57 = arith.constant 0 : index
    %c0_58 = arith.constant 0 : index
    %188 = vector.load %arg1[%c19, %c0_57, %c0_58] : memref<32x8x128xf32, #tpu.memory_space<vmem>>, vector<1x8x128xf32>
    %189 = vector.shape_cast %188 : vector<1x8x128xf32> to vector<8x128xf32>
    %c19_59 = arith.constant 19 : index
    %190 = memref.load %arg0[%c19_59] : memref<64xf32, #tpu.memory_space<smem>>
    %191 = vector.broadcast %190 : f32 to vector<8x128xf32>
    %192 = arith.mulf %191, %189 : vector<8x128xf32>
    %193 = arith.addf %183, %192 : vector<8x128xf32>
    %c51 = arith.constant 51 : index
    %194 = memref.load %arg0[%c51] : memref<64xf32, #tpu.memory_space<smem>>
    %195 = vector.broadcast %194 : f32 to vector<8x128xf32>
    %196 = arith.mulf %195, %189 : vector<8x128xf32>
    %197 = arith.addf %187, %196 : vector<8x128xf32>
    %c20 = arith.constant 20 : index
    %c0_60 = arith.constant 0 : index
    %c0_61 = arith.constant 0 : index
    %198 = vector.load %arg1[%c20, %c0_60, %c0_61] : memref<32x8x128xf32, #tpu.memory_space<vmem>>, vector<1x8x128xf32>
    %199 = vector.shape_cast %198 : vector<1x8x128xf32> to vector<8x128xf32>
    %c20_62 = arith.constant 20 : index
    %200 = memref.load %arg0[%c20_62] : memref<64xf32, #tpu.memory_space<smem>>
    %201 = vector.broadcast %200 : f32 to vector<8x128xf32>
    %202 = arith.mulf %201, %199 : vector<8x128xf32>
    %203 = arith.addf %193, %202 : vector<8x128xf32>
    %c52 = arith.constant 52 : index
    %204 = memref.load %arg0[%c52] : memref<64xf32, #tpu.memory_space<smem>>
    %205 = vector.broadcast %204 : f32 to vector<8x128xf32>
    %206 = arith.mulf %205, %199 : vector<8x128xf32>
    %207 = arith.addf %197, %206 : vector<8x128xf32>
    %c21 = arith.constant 21 : index
    %c0_63 = arith.constant 0 : index
    %c0_64 = arith.constant 0 : index
    %208 = vector.load %arg1[%c21, %c0_63, %c0_64] : memref<32x8x128xf32, #tpu.memory_space<vmem>>, vector<1x8x128xf32>
    %209 = vector.shape_cast %208 : vector<1x8x128xf32> to vector<8x128xf32>
    %c21_65 = arith.constant 21 : index
    %210 = memref.load %arg0[%c21_65] : memref<64xf32, #tpu.memory_space<smem>>
    %211 = vector.broadcast %210 : f32 to vector<8x128xf32>
    %212 = arith.mulf %211, %209 : vector<8x128xf32>
    %213 = arith.addf %203, %212 : vector<8x128xf32>
    %c53 = arith.constant 53 : index
    %214 = memref.load %arg0[%c53] : memref<64xf32, #tpu.memory_space<smem>>
    %215 = vector.broadcast %214 : f32 to vector<8x128xf32>
    %216 = arith.mulf %215, %209 : vector<8x128xf32>
    %217 = arith.addf %207, %216 : vector<8x128xf32>
    %c22 = arith.constant 22 : index
    %c0_66 = arith.constant 0 : index
    %c0_67 = arith.constant 0 : index
    %218 = vector.load %arg1[%c22, %c0_66, %c0_67] : memref<32x8x128xf32, #tpu.memory_space<vmem>>, vector<1x8x128xf32>
    %219 = vector.shape_cast %218 : vector<1x8x128xf32> to vector<8x128xf32>
    %c22_68 = arith.constant 22 : index
    %220 = memref.load %arg0[%c22_68] : memref<64xf32, #tpu.memory_space<smem>>
    %221 = vector.broadcast %220 : f32 to vector<8x128xf32>
    %222 = arith.mulf %221, %219 : vector<8x128xf32>
    %223 = arith.addf %213, %222 : vector<8x128xf32>
    %c54 = arith.constant 54 : index
    %224 = memref.load %arg0[%c54] : memref<64xf32, #tpu.memory_space<smem>>
    %225 = vector.broadcast %224 : f32 to vector<8x128xf32>
    %226 = arith.mulf %225, %219 : vector<8x128xf32>
    %227 = arith.addf %217, %226 : vector<8x128xf32>
    %c23 = arith.constant 23 : index
    %c0_69 = arith.constant 0 : index
    %c0_70 = arith.constant 0 : index
    %228 = vector.load %arg1[%c23, %c0_69, %c0_70] : memref<32x8x128xf32, #tpu.memory_space<vmem>>, vector<1x8x128xf32>
    %229 = vector.shape_cast %228 : vector<1x8x128xf32> to vector<8x128xf32>
    %c23_71 = arith.constant 23 : index
    %230 = memref.load %arg0[%c23_71] : memref<64xf32, #tpu.memory_space<smem>>
    %231 = vector.broadcast %230 : f32 to vector<8x128xf32>
    %232 = arith.mulf %231, %229 : vector<8x128xf32>
    %233 = arith.addf %223, %232 : vector<8x128xf32>
    %c55 = arith.constant 55 : index
    %234 = memref.load %arg0[%c55] : memref<64xf32, #tpu.memory_space<smem>>
    %235 = vector.broadcast %234 : f32 to vector<8x128xf32>
    %236 = arith.mulf %235, %229 : vector<8x128xf32>
    %237 = arith.addf %227, %236 : vector<8x128xf32>
    %c24 = arith.constant 24 : index
    %c0_72 = arith.constant 0 : index
    %c0_73 = arith.constant 0 : index
    %238 = vector.load %arg1[%c24, %c0_72, %c0_73] : memref<32x8x128xf32, #tpu.memory_space<vmem>>, vector<1x8x128xf32>
    %239 = vector.shape_cast %238 : vector<1x8x128xf32> to vector<8x128xf32>
    %c24_74 = arith.constant 24 : index
    %240 = memref.load %arg0[%c24_74] : memref<64xf32, #tpu.memory_space<smem>>
    %241 = vector.broadcast %240 : f32 to vector<8x128xf32>
    %242 = arith.mulf %241, %239 : vector<8x128xf32>
    %243 = arith.addf %233, %242 : vector<8x128xf32>
    %c56 = arith.constant 56 : index
    %244 = memref.load %arg0[%c56] : memref<64xf32, #tpu.memory_space<smem>>
    %245 = vector.broadcast %244 : f32 to vector<8x128xf32>
    %246 = arith.mulf %245, %239 : vector<8x128xf32>
    %247 = arith.addf %237, %246 : vector<8x128xf32>
    %c25 = arith.constant 25 : index
    %c0_75 = arith.constant 0 : index
    %c0_76 = arith.constant 0 : index
    %248 = vector.load %arg1[%c25, %c0_75, %c0_76] : memref<32x8x128xf32, #tpu.memory_space<vmem>>, vector<1x8x128xf32>
    %249 = vector.shape_cast %248 : vector<1x8x128xf32> to vector<8x128xf32>
    %c25_77 = arith.constant 25 : index
    %250 = memref.load %arg0[%c25_77] : memref<64xf32, #tpu.memory_space<smem>>
    %251 = vector.broadcast %250 : f32 to vector<8x128xf32>
    %252 = arith.mulf %251, %249 : vector<8x128xf32>
    %253 = arith.addf %243, %252 : vector<8x128xf32>
    %c57 = arith.constant 57 : index
    %254 = memref.load %arg0[%c57] : memref<64xf32, #tpu.memory_space<smem>>
    %255 = vector.broadcast %254 : f32 to vector<8x128xf32>
    %256 = arith.mulf %255, %249 : vector<8x128xf32>
    %257 = arith.addf %247, %256 : vector<8x128xf32>
    %c26 = arith.constant 26 : index
    %c0_78 = arith.constant 0 : index
    %c0_79 = arith.constant 0 : index
    %258 = vector.load %arg1[%c26, %c0_78, %c0_79] : memref<32x8x128xf32, #tpu.memory_space<vmem>>, vector<1x8x128xf32>
    %259 = vector.shape_cast %258 : vector<1x8x128xf32> to vector<8x128xf32>
    %c26_80 = arith.constant 26 : index
    %260 = memref.load %arg0[%c26_80] : memref<64xf32, #tpu.memory_space<smem>>
    %261 = vector.broadcast %260 : f32 to vector<8x128xf32>
    %262 = arith.mulf %261, %259 : vector<8x128xf32>
    %263 = arith.addf %253, %262 : vector<8x128xf32>
    %c58 = arith.constant 58 : index
    %264 = memref.load %arg0[%c58] : memref<64xf32, #tpu.memory_space<smem>>
    %265 = vector.broadcast %264 : f32 to vector<8x128xf32>
    %266 = arith.mulf %265, %259 : vector<8x128xf32>
    %267 = arith.addf %257, %266 : vector<8x128xf32>
    %c27 = arith.constant 27 : index
    %c0_81 = arith.constant 0 : index
    %c0_82 = arith.constant 0 : index
    %268 = vector.load %arg1[%c27, %c0_81, %c0_82] : memref<32x8x128xf32, #tpu.memory_space<vmem>>, vector<1x8x128xf32>
    %269 = vector.shape_cast %268 : vector<1x8x128xf32> to vector<8x128xf32>
    %c27_83 = arith.constant 27 : index
    %270 = memref.load %arg0[%c27_83] : memref<64xf32, #tpu.memory_space<smem>>
    %271 = vector.broadcast %270 : f32 to vector<8x128xf32>
    %272 = arith.mulf %271, %269 : vector<8x128xf32>
    %273 = arith.addf %263, %272 : vector<8x128xf32>
    %c59 = arith.constant 59 : index
    %274 = memref.load %arg0[%c59] : memref<64xf32, #tpu.memory_space<smem>>
    %275 = vector.broadcast %274 : f32 to vector<8x128xf32>
    %276 = arith.mulf %275, %269 : vector<8x128xf32>
    %277 = arith.addf %267, %276 : vector<8x128xf32>
    %c28 = arith.constant 28 : index
    %c0_84 = arith.constant 0 : index
    %c0_85 = arith.constant 0 : index
    %278 = vector.load %arg1[%c28, %c0_84, %c0_85] : memref<32x8x128xf32, #tpu.memory_space<vmem>>, vector<1x8x128xf32>
    %279 = vector.shape_cast %278 : vector<1x8x128xf32> to vector<8x128xf32>
    %c28_86 = arith.constant 28 : index
    %280 = memref.load %arg0[%c28_86] : memref<64xf32, #tpu.memory_space<smem>>
    %281 = vector.broadcast %280 : f32 to vector<8x128xf32>
    %282 = arith.mulf %281, %279 : vector<8x128xf32>
    %283 = arith.addf %273, %282 : vector<8x128xf32>
    %c60 = arith.constant 60 : index
    %284 = memref.load %arg0[%c60] : memref<64xf32, #tpu.memory_space<smem>>
    %285 = vector.broadcast %284 : f32 to vector<8x128xf32>
    %286 = arith.mulf %285, %279 : vector<8x128xf32>
    %287 = arith.addf %277, %286 : vector<8x128xf32>
    %c29 = arith.constant 29 : index
    %c0_87 = arith.constant 0 : index
    %c0_88 = arith.constant 0 : index
    %288 = vector.load %arg1[%c29, %c0_87, %c0_88] : memref<32x8x128xf32, #tpu.memory_space<vmem>>, vector<1x8x128xf32>
    %289 = vector.shape_cast %288 : vector<1x8x128xf32> to vector<8x128xf32>
    %c29_89 = arith.constant 29 : index
    %290 = memref.load %arg0[%c29_89] : memref<64xf32, #tpu.memory_space<smem>>
    %291 = vector.broadcast %290 : f32 to vector<8x128xf32>
    %292 = arith.mulf %291, %289 : vector<8x128xf32>
    %293 = arith.addf %283, %292 : vector<8x128xf32>
    %c61 = arith.constant 61 : index
    %294 = memref.load %arg0[%c61] : memref<64xf32, #tpu.memory_space<smem>>
    %295 = vector.broadcast %294 : f32 to vector<8x128xf32>
    %296 = arith.mulf %295, %289 : vector<8x128xf32>
    %297 = arith.addf %287, %296 : vector<8x128xf32>
    %c30 = arith.constant 30 : index
    %c0_90 = arith.constant 0 : index
    %c0_91 = arith.constant 0 : index
    %298 = vector.load %arg1[%c30, %c0_90, %c0_91] : memref<32x8x128xf32, #tpu.memory_space<vmem>>, vector<1x8x128xf32>
    %299 = vector.shape_cast %298 : vector<1x8x128xf32> to vector<8x128xf32>
    %c30_92 = arith.constant 30 : index
    %300 = memref.load %arg0[%c30_92] : memref<64xf32, #tpu.memory_space<smem>>
    %301 = vector.broadcast %300 : f32 to vector<8x128xf32>
    %302 = arith.mulf %301, %299 : vector<8x128xf32>
    %303 = arith.addf %293, %302 : vector<8x128xf32>
    %c62 = arith.constant 62 : index
    %304 = memref.load %arg0[%c62] : memref<64xf32, #tpu.memory_space<smem>>
    %305 = vector.broadcast %304 : f32 to vector<8x128xf32>
    %306 = arith.mulf %305, %299 : vector<8x128xf32>
    %307 = arith.addf %297, %306 : vector<8x128xf32>
    %c31 = arith.constant 31 : index
    %c0_93 = arith.constant 0 : index
    %c0_94 = arith.constant 0 : index
    %308 = vector.load %arg1[%c31, %c0_93, %c0_94] : memref<32x8x128xf32, #tpu.memory_space<vmem>>, vector<1x8x128xf32>
    %309 = vector.shape_cast %308 : vector<1x8x128xf32> to vector<8x128xf32>
    %c31_95 = arith.constant 31 : index
    %310 = memref.load %arg0[%c31_95] : memref<64xf32, #tpu.memory_space<smem>>
    %311 = vector.broadcast %310 : f32 to vector<8x128xf32>
    %312 = arith.mulf %311, %309 : vector<8x128xf32>
    %313 = arith.addf %303, %312 : vector<8x128xf32>
    %c63 = arith.constant 63 : index
    %314 = memref.load %arg0[%c63] : memref<64xf32, #tpu.memory_space<smem>>
    %315 = vector.broadcast %314 : f32 to vector<8x128xf32>
    %316 = arith.mulf %315, %309 : vector<8x128xf32>
    %317 = arith.addf %307, %316 : vector<8x128xf32>
    %318 = tpu.concatenate %313, %317 in 1 : vector<8x128xf32>, vector<8x128xf32> -> vector<8x256xf32>
    %319 = tpu.iota {dimensions = array<i32: 1>} : vector<8x256xi32>
    %c128_i32 = arith.constant 128 : i32
    %c0_i32 = arith.constant 0 : i32
    %320 = arith.cmpi eq, %c128_i32, %c0_i32 : i32
    %c1_i32 = arith.constant 1 : i32
    %321 = arith.select %320, %c1_i32, %c128_i32 : i32
    %322 = vector.broadcast %321 : i32 to vector<8x256xi32>
    %323 = arith.remsi %319, %322 : vector<8x256xi32>
    %c0_i32_96 = arith.constant 0 : i32
    %324 = vector.broadcast %c0_i32_96 : i32 to vector<8x256xi32>
    %325 = arith.cmpi ne, %323, %324 : vector<8x256xi32>
    %c0_i32_97 = arith.constant 0 : i32
    %326 = vector.broadcast %c0_i32_97 : i32 to vector<8x256xi32>
    %327 = arith.cmpi slt, %323, %326 : vector<8x256xi32>
    %c0_i32_98 = arith.constant 0 : i32
    %328 = arith.cmpi slt, %321, %c0_i32_98 : i32
    %329 = vector.broadcast %328 : i1 to vector<8x256xi1>
    %330 = vector.broadcast %329 : vector<8x256xi1> to vector<8x256xi1>
    %331 = arith.xori %327, %330 : vector<8x256xi1>
    %332 = arith.andi %331, %325 : vector<8x256xi1>
    %333 = vector.broadcast %321 : i32 to vector<8x256xi32>
    %334 = arith.addi %323, %333 : vector<8x256xi32>
    %335 = arith.select %332, %334, %323 : vector<8x256xi1>, vector<8x256xi32>
    %c0_i32_99 = arith.constant 0 : i32
    %336 = vector.broadcast %c0_i32_99 : i32 to vector<8x256xi32>
    %337 = arith.cmpi eq, %335, %336 : vector<8x256xi32>
    %c127_i32 = arith.constant 127 : i32
    %338 = vector.broadcast %c127_i32 : i32 to vector<8x256xi32>
    %339 = arith.cmpi eq, %335, %338 : vector<8x256xi32>
    %c0_100 = arith.constant 0 : index
    %c0_101 = arith.constant 0 : index
    %c0_102 = arith.constant 0 : index
    %340 = vector.load %arg2[%c0_100, %c0_101, %c0_102] : memref<3x8x24xbf16, #tpu.memory_space<vmem>>, vector<3x8x24xbf16>
    %c0_103 = arith.constant 0 : index
    %c0_104 = arith.constant 0 : index
    %c0_105 = arith.constant 0 : index
    %341 = vector.load %arg3[%c0_103, %c0_104, %c0_105] : memref<3x8x1xf32, #tpu.memory_space<vmem>>, vector<3x8x1xf32>
    %c0_106 = arith.constant 0 : index
    %c0_107 = arith.constant 0 : index
    %c0_108 = arith.constant 0 : index
    %342 = vector.load %arg4[%c0_106, %c0_107, %c0_108] : memref<3x8x1xf32, #tpu.memory_space<vmem>>, vector<3x8x1xf32>
    %c129_i32 = arith.constant 129 : i32
    %343 = tpu.dynamic_rotate %318 by %c129_i32 dim 1 : vector<8x256xf32>, i32 -> vector<8x256xf32>
    %c1_i32_109 = arith.constant 1 : i32
    %344 = tpu.dynamic_rotate %318 by %c1_i32_109 dim 1 : vector<8x256xf32>, i32 -> vector<8x256xf32>
    %345 = arith.select %337, %343, %344 : vector<8x256xi1>, vector<8x256xf32>
    %c127_i32_110 = arith.constant 127 : i32
    %346 = tpu.dynamic_rotate %318 by %c127_i32_110 dim 1 : vector<8x256xf32>, i32 -> vector<8x256xf32>
    %c255_i32 = arith.constant 255 : i32
    %347 = tpu.dynamic_rotate %318 by %c255_i32 dim 1 : vector<8x256xf32>, i32 -> vector<8x256xf32>
    %348 = arith.select %339, %346, %347 : vector<8x256xi1>, vector<8x256xf32>
    %349 = tpu.concatenate %345, %318, %348 in 0 : vector<8x256xf32>, vector<8x256xf32>, vector<8x256xf32> -> vector<24x256xf32>
    %350 = arith.truncf %349 : vector<24x256xf32> to vector<24x256xbf16>
    %351 = vector.extract_strided_slice %340 {offsets = [0, 0, 0], sizes = [1, 8, 24], strides = [1, 1, 1]} : vector<3x8x24xbf16> to vector<1x8x24xbf16>
    %352 = vector.shape_cast %351 : vector<1x8x24xbf16> to vector<8x24xbf16>
    %cst = arith.constant dense<0.000000e+00> : vector<8x256xf32>
    %353 = tpu.matmul %352, %350, %cst {dimension_numbers = #tpu.dot_dimension_numbers<[1], [0], [0], [1], [0, 0, 1, 1], [], []>} : vector<8x24xbf16>, vector<24x256xbf16>, vector<8x256xf32> -> vector<8x256xf32>
    %cst_111 = arith.constant dense<0.000000e+00> : vector<8xf32>
    %354 = vector.multi_reduction <add>, %353, %cst_111 [1] : vector<8x256xf32> to vector<8xf32>
    %355 = vector.shape_cast %354 : vector<8xf32> to vector<8x1xf32>
    %356 = arith.mulf %353, %353 : vector<8x256xf32>
    %cst_112 = arith.constant dense<0.000000e+00> : vector<8xf32>
    %357 = vector.multi_reduction <add>, %356, %cst_112 [1] : vector<8x256xf32> to vector<8xf32>
    %358 = vector.shape_cast %357 : vector<8xf32> to vector<8x1xf32>
    %cst_113 = arith.constant 3.906250e-03 : f32
    %359 = vector.broadcast %cst_113 : f32 to vector<8x1xf32>
    %360 = arith.mulf %355, %359 : vector<8x1xf32>
    %cst_114 = arith.constant 3.906250e-03 : f32
    %361 = vector.broadcast %cst_114 : f32 to vector<8x1xf32>
    %362 = arith.mulf %358, %361 : vector<8x1xf32>
    %363 = arith.mulf %360, %360 : vector<8x1xf32>
    %364 = arith.subf %362, %363 : vector<8x1xf32>
    %cst_115 = arith.constant 0.000000e+00 : f32
    %365 = vector.broadcast %cst_115 : f32 to vector<8x1xf32>
    %366 = arith.maximumf %364, %365 : vector<8x1xf32>
    %367 = vector.extract_strided_slice %341 {offsets = [0, 0, 0], sizes = [1, 8, 1], strides = [1, 1, 1]} : vector<3x8x1xf32> to vector<1x8x1xf32>
    %368 = vector.shape_cast %367 : vector<1x8x1xf32> to vector<8x1xf32>
    %cst_116 = arith.constant 9.99999974E-6 : f32
    %369 = vector.broadcast %cst_116 : f32 to vector<8x1xf32>
    %370 = arith.addf %366, %369 : vector<8x1xf32>
    %371 = math.rsqrt %370 : vector<8x1xf32>
    %372 = arith.mulf %368, %371 : vector<8x1xf32>
    %373 = vector.extract_strided_slice %342 {offsets = [0, 0, 0], sizes = [1, 8, 1], strides = [1, 1, 1]} : vector<3x8x1xf32> to vector<1x8x1xf32>
    %374 = vector.shape_cast %373 : vector<1x8x1xf32> to vector<8x1xf32>
    %375 = arith.mulf %360, %372 : vector<8x1xf32>
    %376 = arith.subf %374, %375 : vector<8x1xf32>
    %377 = vector.broadcast %372 : vector<8x1xf32> to vector<8x256xf32>
    %378 = arith.mulf %353, %377 : vector<8x256xf32>
    %379 = vector.broadcast %376 : vector<8x1xf32> to vector<8x256xf32>
    %380 = arith.addf %378, %379 : vector<8x256xf32>
    %cst_117 = arith.constant 0.000000e+00 : f32
    %381 = vector.broadcast %cst_117 : f32 to vector<8x256xf32>
    %382 = arith.maximumf %380, %381 : vector<8x256xf32>
    %c129_i32_118 = arith.constant 129 : i32
    %383 = tpu.dynamic_rotate %382 by %c129_i32_118 dim 1 : vector<8x256xf32>, i32 -> vector<8x256xf32>
    %c1_i32_119 = arith.constant 1 : i32
    %384 = tpu.dynamic_rotate %382 by %c1_i32_119 dim 1 : vector<8x256xf32>, i32 -> vector<8x256xf32>
    %385 = arith.select %337, %383, %384 : vector<8x256xi1>, vector<8x256xf32>
    %c127_i32_120 = arith.constant 127 : i32
    %386 = tpu.dynamic_rotate %382 by %c127_i32_120 dim 1 : vector<8x256xf32>, i32 -> vector<8x256xf32>
    %c255_i32_121 = arith.constant 255 : i32
    %387 = tpu.dynamic_rotate %382 by %c255_i32_121 dim 1 : vector<8x256xf32>, i32 -> vector<8x256xf32>
    %388 = arith.select %339, %386, %387 : vector<8x256xi1>, vector<8x256xf32>
    %389 = tpu.concatenate %385, %382, %388 in 0 : vector<8x256xf32>, vector<8x256xf32>, vector<8x256xf32> -> vector<24x256xf32>
    %390 = arith.truncf %389 : vector<24x256xf32> to vector<24x256xbf16>
    %391 = vector.extract_strided_slice %340 {offsets = [1, 0, 0], sizes = [1, 8, 24], strides = [1, 1, 1]} : vector<3x8x24xbf16> to vector<1x8x24xbf16>
    %392 = vector.shape_cast %391 : vector<1x8x24xbf16> to vector<8x24xbf16>
    %cst_122 = arith.constant dense<0.000000e+00> : vector<8x256xf32>
    %393 = tpu.matmul %392, %390, %cst_122 {dimension_numbers = #tpu.dot_dimension_numbers<[1], [0], [0], [1], [0, 0, 1, 1], [], []>} : vector<8x24xbf16>, vector<24x256xbf16>, vector<8x256xf32> -> vector<8x256xf32>
    %cst_123 = arith.constant dense<0.000000e+00> : vector<8xf32>
    %394 = vector.multi_reduction <add>, %393, %cst_123 [1] : vector<8x256xf32> to vector<8xf32>
    %395 = vector.shape_cast %394 : vector<8xf32> to vector<8x1xf32>
    %396 = arith.mulf %393, %393 : vector<8x256xf32>
    %cst_124 = arith.constant dense<0.000000e+00> : vector<8xf32>
    %397 = vector.multi_reduction <add>, %396, %cst_124 [1] : vector<8x256xf32> to vector<8xf32>
    %398 = vector.shape_cast %397 : vector<8xf32> to vector<8x1xf32>
    %cst_125 = arith.constant 3.906250e-03 : f32
    %399 = vector.broadcast %cst_125 : f32 to vector<8x1xf32>
    %400 = arith.mulf %395, %399 : vector<8x1xf32>
    %cst_126 = arith.constant 3.906250e-03 : f32
    %401 = vector.broadcast %cst_126 : f32 to vector<8x1xf32>
    %402 = arith.mulf %398, %401 : vector<8x1xf32>
    %403 = arith.mulf %400, %400 : vector<8x1xf32>
    %404 = arith.subf %402, %403 : vector<8x1xf32>
    %cst_127 = arith.constant 0.000000e+00 : f32
    %405 = vector.broadcast %cst_127 : f32 to vector<8x1xf32>
    %406 = arith.maximumf %404, %405 : vector<8x1xf32>
    %407 = vector.extract_strided_slice %341 {offsets = [1, 0, 0], sizes = [1, 8, 1], strides = [1, 1, 1]} : vector<3x8x1xf32> to vector<1x8x1xf32>
    %408 = vector.shape_cast %407 : vector<1x8x1xf32> to vector<8x1xf32>
    %cst_128 = arith.constant 9.99999974E-6 : f32
    %409 = vector.broadcast %cst_128 : f32 to vector<8x1xf32>
    %410 = arith.addf %406, %409 : vector<8x1xf32>
    %411 = math.rsqrt %410 : vector<8x1xf32>
    %412 = arith.mulf %408, %411 : vector<8x1xf32>
    %413 = vector.extract_strided_slice %342 {offsets = [1, 0, 0], sizes = [1, 8, 1], strides = [1, 1, 1]} : vector<3x8x1xf32> to vector<1x8x1xf32>
    %414 = vector.shape_cast %413 : vector<1x8x1xf32> to vector<8x1xf32>
    %415 = arith.mulf %400, %412 : vector<8x1xf32>
    %416 = arith.subf %414, %415 : vector<8x1xf32>
    %417 = vector.broadcast %412 : vector<8x1xf32> to vector<8x256xf32>
    %418 = arith.mulf %393, %417 : vector<8x256xf32>
    %419 = vector.broadcast %416 : vector<8x1xf32> to vector<8x256xf32>
    %420 = arith.addf %418, %419 : vector<8x256xf32>
    %cst_129 = arith.constant 0.000000e+00 : f32
    %421 = vector.broadcast %cst_129 : f32 to vector<8x256xf32>
    %422 = arith.maximumf %420, %421 : vector<8x256xf32>
    %c129_i32_130 = arith.constant 129 : i32
    %423 = tpu.dynamic_rotate %422 by %c129_i32_130 dim 1 : vector<8x256xf32>, i32 -> vector<8x256xf32>
    %c1_i32_131 = arith.constant 1 : i32
    %424 = tpu.dynamic_rotate %422 by %c1_i32_131 dim 1 : vector<8x256xf32>, i32 -> vector<8x256xf32>
    %425 = arith.select %337, %423, %424 : vector<8x256xi1>, vector<8x256xf32>
    %c127_i32_132 = arith.constant 127 : i32
    %426 = tpu.dynamic_rotate %422 by %c127_i32_132 dim 1 : vector<8x256xf32>, i32 -> vector<8x256xf32>
    %c255_i32_133 = arith.constant 255 : i32
    %427 = tpu.dynamic_rotate %422 by %c255_i32_133 dim 1 : vector<8x256xf32>, i32 -> vector<8x256xf32>
    %428 = arith.select %339, %426, %427 : vector<8x256xi1>, vector<8x256xf32>
    %429 = tpu.concatenate %425, %422, %428 in 0 : vector<8x256xf32>, vector<8x256xf32>, vector<8x256xf32> -> vector<24x256xf32>
    %430 = arith.truncf %429 : vector<24x256xf32> to vector<24x256xbf16>
    %431 = vector.extract_strided_slice %340 {offsets = [2, 0, 0], sizes = [1, 8, 24], strides = [1, 1, 1]} : vector<3x8x24xbf16> to vector<1x8x24xbf16>
    %432 = vector.shape_cast %431 : vector<1x8x24xbf16> to vector<8x24xbf16>
    %cst_134 = arith.constant dense<0.000000e+00> : vector<8x256xf32>
    %433 = tpu.matmul %432, %430, %cst_134 {dimension_numbers = #tpu.dot_dimension_numbers<[1], [0], [0], [1], [0, 0, 1, 1], [], []>} : vector<8x24xbf16>, vector<24x256xbf16>, vector<8x256xf32> -> vector<8x256xf32>
    %cst_135 = arith.constant dense<0.000000e+00> : vector<8xf32>
    %434 = vector.multi_reduction <add>, %433, %cst_135 [1] : vector<8x256xf32> to vector<8xf32>
    %435 = vector.shape_cast %434 : vector<8xf32> to vector<8x1xf32>
    %436 = arith.mulf %433, %433 : vector<8x256xf32>
    %cst_136 = arith.constant dense<0.000000e+00> : vector<8xf32>
    %437 = vector.multi_reduction <add>, %436, %cst_136 [1] : vector<8x256xf32> to vector<8xf32>
    %438 = vector.shape_cast %437 : vector<8xf32> to vector<8x1xf32>
    %cst_137 = arith.constant 3.906250e-03 : f32
    %439 = vector.broadcast %cst_137 : f32 to vector<8x1xf32>
    %440 = arith.mulf %435, %439 : vector<8x1xf32>
    %cst_138 = arith.constant 3.906250e-03 : f32
    %441 = vector.broadcast %cst_138 : f32 to vector<8x1xf32>
    %442 = arith.mulf %438, %441 : vector<8x1xf32>
    %443 = arith.mulf %440, %440 : vector<8x1xf32>
    %444 = arith.subf %442, %443 : vector<8x1xf32>
    %cst_139 = arith.constant 0.000000e+00 : f32
    %445 = vector.broadcast %cst_139 : f32 to vector<8x1xf32>
    %446 = arith.maximumf %444, %445 : vector<8x1xf32>
    %447 = vector.extract_strided_slice %341 {offsets = [2, 0, 0], sizes = [1, 8, 1], strides = [1, 1, 1]} : vector<3x8x1xf32> to vector<1x8x1xf32>
    %448 = vector.shape_cast %447 : vector<1x8x1xf32> to vector<8x1xf32>
    %cst_140 = arith.constant 9.99999974E-6 : f32
    %449 = vector.broadcast %cst_140 : f32 to vector<8x1xf32>
    %450 = arith.addf %446, %449 : vector<8x1xf32>
    %451 = math.rsqrt %450 : vector<8x1xf32>
    %452 = arith.mulf %448, %451 : vector<8x1xf32>
    %453 = vector.extract_strided_slice %342 {offsets = [2, 0, 0], sizes = [1, 8, 1], strides = [1, 1, 1]} : vector<3x8x1xf32> to vector<1x8x1xf32>
    %454 = vector.shape_cast %453 : vector<1x8x1xf32> to vector<8x1xf32>
    %455 = arith.mulf %440, %452 : vector<8x1xf32>
    %456 = arith.subf %454, %455 : vector<8x1xf32>
    %457 = vector.broadcast %452 : vector<8x1xf32> to vector<8x256xf32>
    %458 = arith.mulf %433, %457 : vector<8x256xf32>
    %459 = vector.broadcast %456 : vector<8x1xf32> to vector<8x256xf32>
    %460 = arith.addf %458, %459 : vector<8x256xf32>
    %cst_141 = arith.constant 0.000000e+00 : f32
    %461 = vector.broadcast %cst_141 : f32 to vector<8x256xf32>
    %462 = arith.maximumf %460, %461 : vector<8x256xf32>
    %c254_i32 = arith.constant 254 : i32
    %463 = tpu.dynamic_rotate %462 by %c254_i32 dim 1 : vector<8x256xf32>, i32 -> vector<8x256xf32>
    %c126_i32 = arith.constant 126 : i32
    %464 = vector.broadcast %c126_i32 : i32 to vector<8x256xi32>
    %465 = arith.cmpi slt, %335, %464 : vector<8x256xi32>
    %cst_142 = arith.constant 0.000000e+00 : f32
    %466 = vector.broadcast %cst_142 : f32 to vector<8x256xf32>
    %467 = arith.select %465, %463, %466 : vector<8x256xi1>, vector<8x256xf32>
    %c255_i32_143 = arith.constant 255 : i32
    %468 = tpu.dynamic_rotate %462 by %c255_i32_143 dim 1 : vector<8x256xf32>, i32 -> vector<8x256xf32>
    %c127_i32_144 = arith.constant 127 : i32
    %469 = vector.broadcast %c127_i32_144 : i32 to vector<8x256xi32>
    %470 = arith.cmpi slt, %335, %469 : vector<8x256xi32>
    %cst_145 = arith.constant 0.000000e+00 : f32
    %471 = vector.broadcast %cst_145 : f32 to vector<8x256xf32>
    %472 = arith.select %470, %468, %471 : vector<8x256xi1>, vector<8x256xf32>
    %c1_i32_146 = arith.constant 1 : i32
    %473 = tpu.dynamic_rotate %462 by %c1_i32_146 dim 1 : vector<8x256xf32>, i32 -> vector<8x256xf32>
    %c1_i32_147 = arith.constant 1 : i32
    %474 = vector.broadcast %c1_i32_147 : i32 to vector<8x256xi32>
    %475 = arith.cmpi sge, %335, %474 : vector<8x256xi32>
    %cst_148 = arith.constant 0.000000e+00 : f32
    %476 = vector.broadcast %cst_148 : f32 to vector<8x256xf32>
    %477 = arith.select %475, %473, %476 : vector<8x256xi1>, vector<8x256xf32>
    %478 = tpu.concatenate %467, %472, %462, %477 in 0 : vector<8x256xf32>, vector<8x256xf32>, vector<8x256xf32>, vector<8x256xf32> -> vector<32x256xf32>
    %479 = arith.truncf %478 : vector<32x256xf32> to vector<32x256xbf16>
    %c0_149 = arith.constant 0 : index
    %c0_150 = arith.constant 0 : index
    %480 = vector.load %arg5[%c0_149, %c0_150] : memref<8x32xbf16, #tpu.memory_space<vmem>>, vector<8x32xbf16>
    %cst_151 = arith.constant dense<0.000000e+00> : vector<8x256xf32>
    %481 = tpu.matmul %480, %479, %cst_151 {dimension_numbers = #tpu.dot_dimension_numbers<[1], [0], [0], [1], [0, 0, 1, 1], [], []>} : vector<8x32xbf16>, vector<32x256xbf16>, vector<8x256xf32> -> vector<8x256xf32>
    %482 = vector.extract_strided_slice %481 {offsets = [0, 0], sizes = [8, 128], strides = [1, 1]} : vector<8x256xf32> to vector<8x128xf32>
    %483 = tpu.transpose %482, [1, 0] : vector<8x128xf32> -> vector<128x8xf32>
    %c0_152 = arith.constant 0 : index
    %c0_153 = arith.constant 0 : index
    %c0_154 = arith.constant 0 : index
    %484 = vector.load %arg6[%c0_152, %c0_153, %c0_154] : memref<2x128x8xf32, #tpu.memory_space<vmem>>, vector<1x128x8xf32>
    %485 = vector.shape_cast %484 : vector<1x128x8xf32> to vector<128x8xf32>
    %486 = vector.shape_cast %483 : vector<128x8xf32> to vector<1x128x8xf32>
    tpu.vector_store %arg6[%c0_152, %c0_153, %c0_154], %486 {strides = array<i32>} : memref<2x128x8xf32, #tpu.memory_space<vmem>>, vector<1x128x8xf32>,
    %487 = vector.extract_strided_slice %481 {offsets = [0, 128], sizes = [8, 128], strides = [1, 1]} : vector<8x256xf32> to vector<8x128xf32>
    %488 = tpu.transpose %487, [1, 0] : vector<8x128xf32> -> vector<128x8xf32>
    %c1_155 = arith.constant 1 : index
    %c0_156 = arith.constant 0 : index
    %c0_157 = arith.constant 0 : index
    %489 = vector.load %arg6[%c1_155, %c0_156, %c0_157] : memref<2x128x8xf32, #tpu.memory_space<vmem>>, vector<1x128x8xf32>
    %490 = vector.shape_cast %489 : vector<1x128x8xf32> to vector<128x8xf32>
    %491 = vector.shape_cast %488 : vector<128x8xf32> to vector<1x128x8xf32>
    tpu.vector_store %arg6[%c1_155, %c0_156, %c0_157], %491 {strides = array<i32>} : memref<2x128x8xf32, #tpu.memory_space<vmem>>, vector<1x128x8xf32>,
    return
  }
}

</mosaic_0001>

<bundles_post_ra>
// kernel: frequency_representation_forward.1
= control target key start
LH: loop header
LB: loop body
LE: loop exit
PB: predicated region body
PF: predicated region fallthrough
CT: control target
= control target key end

     0   :  { %11 = vsyncpa [#allocation4], 0  ;;  %s1383_s0 = inlined_call_operand.vmem [shape: f32[64], index: 0, kind: input, shape index: {}]   ;;  %s1384_s1 = inlined_call_operand.hbm [shape: f32[32,8,128], index: 1, kind: input, shape index: {}]   ;;  %s1385_s2 = inlined_call_operand.vmem [shape: bf16[3,8,24], index: 2, kind: input, shape index: {}]   ;;  %s1386_s3 = inlined_call_operand.vmem [shape: f32[3,8,1], index: 3, kind: input, shape index: {}]   ;;  %s1387_s4 = inlined_call_operand.vmem [shape: f32[3,8,1], index: 4, kind: input, shape index: {}]   ;;  %s1388_s5 = inlined_call_operand.vmem [shape: bf16[8,32], index: 5, kind: input, shape index: {}]   ;;  %s1389_s6 = inlined_call_operand.vmem [shape: f32[2,128,8], index: 6, kind: output, shape index: {}]  }
   0x1   :  { %s18_s23 = sshll.u32 %s1383_s0, 4  ;;  %s19_s23 = int_to_ptr.vmem [resolvable:$true] %s18_s23 }
   0x2   :  { %12 = vsyncpa [#allocation3], 0  ;;  %s26_s26 = sshll.u32 %s1384_s1, 4  ;;  %s1081_s27 = smov [#allocation2]   ;;  %s27_s26 = int_to_ptr.hbm [resolvable:$true] %s26_s26 }
   0x3   :  { %21 = dma.vmem_to_smem %s19_s23, 16, %s1081_s27, [#allocation4]  }
   0x4   :  { %s1082_s28 = smov [#allocation5]   ;;  %s1083_s30 = smov 128  }
   0x5   :  { %s28_s29 = sshll.u32 %s1082_s28, 4  ;;  %s1084_s7 = smov 8   ;;  %s29_s29 = int_to_ptr.vmem [resolvable:$true] %s28_s29 }
   0x6   :  { %34 = dma.hbm_to_vmem [thread:$0]  %s27_s26, 4096, %s29_s29, [#allocation3], %s1083_s30, %s1083_s30, %s1084_s7  }
   0x7   :  { %1077 = dma.done.wait [#allocation4], 16  }
   0x8   :  { %1078 = vsyncadd [#allocation4], 4294967280 }
   0x9   :  { %1079 = dma.done.wait [#allocation3], 4096  }
   0xa   :  { %1080 = vsyncadd [#allocation3], 4294963200 }
   0xb   :  { %51 = sfence }
   0xc   :  { %s54_s0 = sld [smem:[#allocation2]]  ;;  %v53_v0 = vld [vmem:[#allocation5] sm:$0xff]  ;;  %v61_v2 = vld [vmem:[#allocation5 + $0x8] sm:$0xff]  ;;  %v71_v7 = vld [vmem:[#allocation5 + $0x10] sm:$0xff]  ;;  %vm436_vm3 = vcmask 1043456   ;;  %vm432_vm7 = vcmask 195584  }
   0xd   :  { %s878_s8 = sld [smem:[#allocation2 + $0x20]]  ;;  %v81_v12 = vld [vmem:[#allocation5 + $0x18] sm:$0xff]  ;;  %v91_v19 = vld [vmem:[#allocation5 + $0x20] sm:$0xff]  ;;  %v101_v26 = vld [vmem:[#allocation5 + $0x28] sm:$0xff] }
   0xe   :  { %s879_s9 = sld [smem:[#allocation2 + $0x1]]  ;;  %v111_v33 = vld [vmem:[#allocation5 + $0x30] sm:$0xff]  ;;  %v121_v40 = vld [vmem:[#allocation5 + $0x38] sm:$0xff]  ;;  %v131_v47 = vld [vmem:[#allocation5 + $0x40] sm:$0xff] }
   0xf   :  { %s880_s10 = sld [smem:[#allocation2 + $0x21]]  ;;  %v141_v54 = vld [vmem:[#allocation5 + $0x48] sm:$0xff]  ;;  %v151_v61 = vld [vmem:[#allocation5 + $0x50] sm:$0xff] }
  0x10   :  { %s881_s1 = sld [smem:[#allocation2 + $0x2]] }
  0x11   :  { %s882_s11 = sld [smem:[#allocation2 + $0x22]] }
  0x12   :  { %v55_v1 = vstv %s54_s0  ;;  %s883_s12 = sld [smem:[#allocation2 + $0x3]] }
  0x13   :  { %v56_v3 = vmul.f32 %v55_v1, %v53_v0  ;;  %v58_v4 = vstv %s878_s8  ;;  %s884_s13 = sld [smem:[#allocation2 + $0x23]] }
  0x14   :  { %v59_v5 = vmul.f32 %v58_v4, %v53_v0  ;;  %v63_v6 = vstv %s879_s9  ;;  %s885_s14 = sld [smem:[#allocation2 + $0x4]]  ;;  %v161_v4 = vld [vmem:[#allocation5 + $0x58] sm:$0xff] }
  0x15   :  { %v64_v8 = vmul.f32 %v63_v6, %v61_v2  ;;  %v67_v9 = vstv %s880_s10  ;;  %s886_s15 = sld [smem:[#allocation2 + $0x24]] }
  0x16   :  { %v68_v10 = vmul.f32 %v67_v9, %v61_v2  ;;  %v73_v11 = vstv %s881_s1  ;;  %s887_s16 = sld [smem:[#allocation2 + $0x5]] }
  0x17   :  { %v65_v13 = vadd.f32 %v64_v8, %v56_v3  ;;  %v74_v14 = vmul.f32 %v73_v11, %v71_v7  ;;  %v77_v15 = vstv %s882_s11  ;;  %s888_s17 = sld [smem:[#allocation2 + $0x25]]  ;;  %v171_v11 = vld [vmem:[#allocation5 + $0x60] sm:$0xff] }
  0x18   :  { %v69_v16 = vadd.f32 %v68_v10, %v59_v5  ;;  %v78_v17 = vmul.f32 %v77_v15, %v71_v7  ;;  %v83_v18 = vstv %s883_s12  ;;  %s889_s18 = sld [smem:[#allocation2 + $0x6]] }
  0x19   :  { %v75_v20 = vadd.f32 %v74_v14, %v65_v13  ;;  %v84_v21 = vmul.f32 %v83_v18, %v81_v12  ;;  %v87_v22 = vstv %s884_s13  ;;  %s890_s19 = sld [smem:[#allocation2 + $0x26]]  ;;  %v181_v18 = vld [vmem:[#allocation5 + $0x68] sm:$0xff] }
  0x1a   :  { %v79_v23 = vadd.f32 %v78_v17, %v69_v16  ;;  %v88_v24 = vmul.f32 %v87_v22, %v81_v12  ;;  %v93_v25 = vstv %s885_s14  ;;  %s891_s20 = sld [smem:[#allocation2 + $0x7]] }
  0x1b   :  { %v85_v27 = vadd.f32 %v84_v21, %v75_v20  ;;  %v94_v28 = vmul.f32 %v93_v25, %v91_v19  ;;  %v97_v29 = vstv %s886_s15  ;;  %s892_s21 = sld [smem:[#allocation2 + $0x27]]  ;;  %v191_v25 = vld [vmem:[#allocation5 + $0x70] sm:$0xff] }
  0x1c   :  { %v89_v30 = vadd.f32 %v88_v24, %v79_v23  ;;  %v98_v31 = vmul.f32 %v97_v29, %v91_v19  ;;  %v103_v32 = vstv %s887_s16  ;;  %s893_s22 = sld [smem:[#allocation2 + $0x8]] }
  0x1d   :  { %v95_v34 = vadd.f32 %v94_v28, %v85_v27  ;;  %v104_v35 = vmul.f32 %v103_v32, %v101_v26  ;;  %v107_v36 = vstv %s888_s17  ;;  %s894_s23 = sld [smem:[#allocation2 + $0x28]]  ;;  %v201_v32 = vld [vmem:[#allocation5 + $0x78] sm:$0xff] }
  0x1e   :  { %v99_v37 = vadd.f32 %v98_v31, %v89_v30  ;;  %v108_v38 = vmul.f32 %v107_v36, %v101_v26  ;;  %v113_v39 = vstv %s889_s18  ;;  %s895_s24 = sld [smem:[#allocation2 + $0x9]] }
  0x1f   :  { %v105_v41 = vadd.f32 %v104_v35, %v95_v34  ;;  %v114_v42 = vmul.f32 %v113_v39, %v111_v33  ;;  %v117_v43 = vstv %s890_s19  ;;  %s896_s25 = sld [smem:[#allocation2 + $0x29]]  ;;  %v211_v39 = vld [vmem:[#allocation5 + $0x80] sm:$0xff] }
  0x20   :  { %v109_v44 = vadd.f32 %v108_v38, %v99_v37  ;;  %v118_v45 = vmul.f32 %v117_v43, %v111_v33  ;;  %v123_v46 = vstv %s891_s20  ;;  %s897_s26 = sld [smem:[#allocation2 + $0xa]] }
  0x21   :  { %v115_v48 = vadd.f32 %v114_v42, %v105_v41  ;;  %v124_v49 = vmul.f32 %v123_v46, %v121_v40  ;;  %v127_v50 = vstv %s892_s21  ;;  %s898_s27 = sld [smem:[#allocation2 + $0x2a]]  ;;  %v221_v46 = vld [vmem:[#allocation5 + $0x88] sm:$0xff] }
  0x22   :  { %v119_v51 = vadd.f32 %v118_v45, %v109_v44  ;;  %v128_v52 = vmul.f32 %v127_v50, %v121_v40  ;;  %v133_v53 = vstv %s893_s22  ;;  %s899_s28 = sld [smem:[#allocation2 + $0xb]] }
  0x23   :  { %v125_v55 = vadd.f32 %v124_v49, %v115_v48  ;;  %v134_v56 = vmul.f32 %v133_v53, %v131_v47  ;;  %v137_v57 = vstv %s894_s23  ;;  %s900_s29 = sld [smem:[#allocation2 + $0x2b]]  ;;  %v231_v53 = vld [vmem:[#allocation5 + $0x90] sm:$0xff] }
  0x24   :  { %v129_v58 = vadd.f32 %v128_v52, %v119_v51  ;;  %v138_v59 = vmul.f32 %v137_v57, %v131_v47  ;;  %v143_v60 = vstv %s895_s24  ;;  %s901_s30 = sld [smem:[#allocation2 + $0xc]] }
  0x25   :  { %v135_v62 = vadd.f32 %v134_v56, %v125_v55  ;;  %v144_v63 = vmul.f32 %v143_v60, %v141_v54  ;;  %v147_v0 = vstv %s896_s25  ;;  %s902_s7 = sld [smem:[#allocation2 + $0x2c]]  ;;  %v241_v60 = vld [vmem:[#allocation5 + $0x98] sm:$0xff] }
  0x26   :  { %v139_v1 = vadd.f32 %v138_v59, %v129_v58  ;;  %v148_v2 = vmul.f32 %v147_v0, %v141_v54  ;;  %v153_v3 = vstv %s897_s26  ;;  %s903_s0 = sld [smem:[#allocation2 + $0xd]] }
  0x27   :  { %v145_v5 = vadd.f32 %v144_v63, %v135_v62  ;;  %v154_v6 = vmul.f32 %v153_v3, %v151_v61  ;;  %v157_v7 = vstv %s898_s27  ;;  %s904_s8 = sld [smem:[#allocation2 + $0x2d]]  ;;  %v251_v3 = vld [vmem:[#allocation5 + $0xa0] sm:$0xff] }
  0x28   :  { %v149_v8 = vadd.f32 %v148_v2, %v139_v1  ;;  %v158_v9 = vmul.f32 %v157_v7, %v151_v61  ;;  %v163_v10 = vstv %s899_s28  ;;  %s905_s9 = sld [smem:[#allocation2 + $0xe]] }
  0x29   :  { %v155_v12 = vadd.f32 %v154_v6, %v145_v5  ;;  %v164_v13 = vmul.f32 %v163_v10, %v161_v4  ;;  %v167_v14 = vstv %s900_s29  ;;  %s906_s10 = sld [smem:[#allocation2 + $0x2e]]  ;;  %v261_v10 = vld [vmem:[#allocation5 + $0xa8] sm:$0xff] }
  0x2a   :  { %v159_v15 = vadd.f32 %v158_v9, %v149_v8  ;;  %v168_v16 = vmul.f32 %v167_v14, %v161_v4  ;;  %v173_v17 = vstv %s901_s30  ;;  %s907_s1 = sld [smem:[#allocation2 + $0xf]] }
  0x2b   :  { %v165_v19 = vadd.f32 %v164_v13, %v155_v12  ;;  %v174_v20 = vmul.f32 %v173_v17, %v171_v11  ;;  %v177_v21 = vstv %s902_s7  ;;  %s908_s11 = sld [smem:[#allocation2 + $0x2f]]  ;;  %v271_v17 = vld [vmem:[#allocation5 + $0xb0] sm:$0xff] }
  0x2c   :  { %v169_v22 = vadd.f32 %v168_v16, %v159_v15  ;;  %v178_v23 = vmul.f32 %v177_v21, %v171_v11  ;;  %v183_v24 = vstv %s903_s0  ;;  %s909_s12 = sld [smem:[#allocation2 + $0x10]] }
  0x2d   :  { %v175_v26 = vadd.f32 %v174_v20, %v165_v19  ;;  %v184_v27 = vmul.f32 %v183_v24, %v181_v18  ;;  %v187_v28 = vstv %s904_s8  ;;  %s910_s13 = sld [smem:[#allocation2 + $0x30]]  ;;  %v281_v24 = vld [vmem:[#allocation5 + $0xb8] sm:$0xff] }
  0x2e   :  { %v179_v29 = vadd.f32 %v178_v23, %v169_v22  ;;  %v188_v30 = vmul.f32 %v187_v28, %v181_v18  ;;  %v193_v31 = vstv %s905_s9  ;;  %s911_s14 = sld [smem:[#allocation2 + $0x11]] }
  0x2f   :  { %v185_v33 = vadd.f32 %v184_v27, %v175_v26  ;;  %v194_v34 = vmul.f32 %v193_v31, %v191_v25  ;;  %v197_v35 = vstv %s906_s10  ;;  %s912_s15 = sld [smem:[#allocation2 + $0x31]]  ;;  %v291_v31 = vld [vmem:[#allocation5 + $0xc0] sm:$0xff] }
  0x30   :  { %v189_v36 = vadd.f32 %v188_v30, %v179_v29  ;;  %v198_v37 = vmul.f32 %v197_v35, %v191_v25  ;;  %v203_v38 = vstv %s907_s1  ;;  %s913_s16 = sld [smem:[#allocation2 + $0x12]] }
  0x31   :  { %v195_v40 = vadd.f32 %v194_v34, %v185_v33  ;;  %v204_v41 = vmul.f32 %v203_v38, %v201_v32  ;;  %v207_v42 = vstv %s908_s11  ;;  %s914_s17 = sld [smem:[#allocation2 + $0x32]]  ;;  %v301_v38 = vld [vmem:[#allocation5 + $0xc8] sm:$0xff] }
  0x32   :  { %v199_v43 = vadd.f32 %v198_v37, %v189_v36  ;;  %v208_v44 = vmul.f32 %v207_v42, %v201_v32  ;;  %v213_v45 = vstv %s909_s12  ;;  %s915_s18 = sld [smem:[#allocation2 + $0x13]] }
  0x33   :  { %v205_v47 = vadd.f32 %v204_v41, %v195_v40  ;;  %v214_v48 = vmul.f32 %v213_v45, %v211_v39  ;;  %v217_v49 = vstv %s910_s13  ;;  %s916_s19 = sld [smem:[#allocation2 + $0x33]]  ;;  %v311_v45 = vld [vmem:[#allocation5 + $0xd0] sm:$0xff] }
  0x34   :  { %v209_v50 = vadd.f32 %v208_v44, %v199_v43  ;;  %v218_v51 = vmul.f32 %v217_v49, %v211_v39  ;;  %v223_v52 = vstv %s911_s14  ;;  %s917_s20 = sld [smem:[#allocation2 + $0x14]] }
  0x35   :  { %v215_v54 = vadd.f32 %v214_v48, %v205_v47  ;;  %v224_v55 = vmul.f32 %v223_v52, %v221_v46  ;;  %v227_v56 = vstv %s912_s15  ;;  %s918_s21 = sld [smem:[#allocation2 + $0x34]]  ;;  %v321_v52 = vld [vmem:[#allocation5 + $0xd8] sm:$0xff] }
  0x36   :  { %v219_v57 = vadd.f32 %v218_v51, %v209_v50  ;;  %v228_v58 = vmul.f32 %v227_v56, %v221_v46  ;;  %v233_v59 = vstv %s913_s16  ;;  %s919_s22 = sld [smem:[#allocation2 + $0x15]] }
  0x37   :  { %v225_v61 = vadd.f32 %v224_v55, %v215_v54  ;;  %v234_v62 = vmul.f32 %v233_v59, %v231_v53  ;;  %v237_v63 = vstv %s914_s17  ;;  %s920_s23 = sld [smem:[#allocation2 + $0x35]]  ;;  %v331_v59 = vld [vmem:[#allocation5 + $0xe0] sm:$0xff] }
  0x38   :  { %v229_v0 = vadd.f32 %v228_v58, %v219_v57  ;;  %v238_v1 = vmul.f32 %v237_v63, %v231_v53  ;;  %v243_v2 = vstv %s915_s18  ;;  %s921_s24 = sld [smem:[#allocation2 + $0x16]]  ;;  %s1085_s18 = smov 127  }
  0x39   :  { %v235_v4 = vadd.f32 %v234_v62, %v225_v61  ;;  %v244_v5 = vmul.f32 %v243_v2, %v241_v60  ;;  %v247_v6 = vstv %s916_s19  ;;  %s922_s25 = sld [smem:[#allocation2 + $0x36]]  ;;  %v341_v2 = vld [vmem:[#allocation5 + $0xe8] sm:$0xff]  ;;  %s1086_s19 = smov 1  }
  0x3a   :  { %v239_v7 = vadd.f32 %v238_v1, %v229_v0  ;;  %v248_v8 = vmul.f32 %v247_v6, %v241_v60  ;;  %v253_v9 = vstv %s917_s20  ;;  %s923_s26 = sld [smem:[#allocation2 + $0x17]] }
  0x3b   :  { %v245_v11 = vadd.f32 %v244_v5, %v235_v4  ;;  %v254_v12 = vmul.f32 %v253_v9, %v251_v3  ;;  %v257_v13 = vstv %s918_s21  ;;  %s924_s27 = sld [smem:[#allocation2 + $0x37]]  ;;  %v351_v9 = vld [vmem:[#allocation5 + $0xf0] sm:$0xff] }
  0x3c   :  { %v249_v14 = vadd.f32 %v248_v8, %v239_v7  ;;  %v258_v15 = vmul.f32 %v257_v13, %v251_v3  ;;  %v263_v16 = vstv %s919_s22  ;;  %s925_s28 = sld [smem:[#allocation2 + $0x18]] }
  0x3d   :  { %v255_v18 = vadd.f32 %v254_v12, %v245_v11  ;;  %v264_v19 = vmul.f32 %v263_v16, %v261_v10  ;;  %v267_v20 = vstv %s920_s23  ;;  %s926_s29 = sld [smem:[#allocation2 + $0x38]]  ;;  %v361_v16 = vld [vmem:[#allocation5 + $0xf8] sm:$0xff] }
  0x3e   :  { %v259_v21 = vadd.f32 %v258_v15, %v249_v14  ;;  %v268_v22 = vmul.f32 %v267_v20, %v261_v10  ;;  %v273_v23 = vstv %s921_s24  ;;  %s927_s30 = sld [smem:[#allocation2 + $0x19]] }
  0x3f   :  { %v265_v25 = vadd.f32 %v264_v19, %v255_v18  ;;  %v274_v26 = vmul.f32 %v273_v23, %v271_v17  ;;  %v277_v27 = vstv %s922_s25  ;;  %s928_s7 = sld [smem:[#allocation2 + $0x39]] }
  0x40   :  { %v269_v28 = vadd.f32 %v268_v22, %v259_v21  ;;  %v278_v29 = vmul.f32 %v277_v27, %v271_v17  ;;  %v283_v30 = vstv %s923_s26  ;;  %s929_s0 = sld [smem:[#allocation2 + $0x1a]] }
  0x41   :  { %v275_v32 = vadd.f32 %v274_v26, %v265_v25  ;;  %v284_v33 = vmul.f32 %v283_v30, %v281_v24  ;;  %v287_v34 = vstv %s924_s27  ;;  %s930_s8 = sld [smem:[#allocation2 + $0x3a]] }
  0x42   :  { %v279_v35 = vadd.f32 %v278_v29, %v269_v28  ;;  %v288_v36 = vmul.f32 %v287_v34, %v281_v24  ;;  %v293_v37 = vstv %s925_s28  ;;  %s931_s9 = sld [smem:[#allocation2 + $0x1b]] }
  0x43   :  { %v285_v39 = vadd.f32 %v284_v33, %v275_v32  ;;  %v294_v40 = vmul.f32 %v293_v37, %v291_v31  ;;  %v297_v41 = vstv %s926_s29  ;;  %s932_s10 = sld [smem:[#allocation2 + $0x3b]] }
  0x44   :  { %v289_v42 = vadd.f32 %v288_v36, %v279_v35  ;;  %v298_v43 = vmul.f32 %v297_v41, %v291_v31  ;;  %v303_v44 = vstv %s927_s30  ;;  %s933_s1 = sld [smem:[#allocation2 + $0x1c]]  ;;  %v370_v31 = vlaneseq }
  0x45   :  { %v295_v46 = vadd.f32 %v294_v40, %v285_v39  ;;  %v304_v47 = vmul.f32 %v303_v44, %v301_v38  ;;  %v307_v48 = vstv %s928_s7  ;;  %s934_s11 = sld [smem:[#allocation2 + $0x3c]] }
  0x46   :  { %v299_v49 = vadd.f32 %v298_v43, %v289_v42  ;;  %v308_v50 = vmul.f32 %v307_v48, %v301_v38  ;;  %v313_v51 = vstv %s929_s0  ;;  %s935_s12 = sld [smem:[#allocation2 + $0x1d]]  ;;  %v1133_v32 = vand.u32 127, %v370_v31 }
  0x47   :  { %v305_v53 = vadd.f32 %v304_v47, %v295_v46  ;;  %v314_v54 = vmul.f32 %v313_v51, %v311_v45  ;;  %v317_v55 = vstv %s930_s8  ;;  %s936_s13 = sld [smem:[#allocation2 + $0x3d]] }
  0x48   :  { %v309_v56 = vadd.f32 %v308_v50, %v299_v49  ;;  %v318_v57 = vmul.f32 %v317_v55, %v311_v45  ;;  %v323_v58 = vstv %s931_s9  ;;  %s937_s14 = sld [smem:[#allocation2 + $0x1e]]  ;;  %v372_v33 = vadd.s32 128, %v1133_v32  ;;  %v401_v55 = vld [vmem:[%s1385_s2] sm:$0xf] }
  0x49   :  { %v315_v60 = vadd.f32 %v314_v54, %v305_v53  ;;  %v324_v61 = vmul.f32 %v323_v58, %v321_v52  ;;  %v327_v62 = vstv %s932_s10  ;;  %s938_s15 = sld [smem:[#allocation2 + $0x3e]]  ;;  %vm423_vm0 = vcmp.lt.s32.totalorder %v1133_v32, 127 }
  0x4a   :  { %v319_v63 = vadd.f32 %v318_v57, %v309_v56  ;;  %v328_v0 = vmul.f32 %v327_v62, %v321_v52  ;;  %v333_v1 = vstv %s933_s1  ;;  %s939_s16 = sld [smem:[#allocation2 + $0x1f]]  ;;  %v1136_v34 = vand.u32 127, %v372_v33 }
  0x4b   :  { %v325_v3 = vadd.f32 %v324_v61, %v315_v60  ;;  %v334_v4 = vmul.f32 %v333_v1, %v331_v59  ;;  %v337_v5 = vstv %s934_s11  ;;  %s940_s17 = sld [smem:[#allocation2 + $0x3f]]  ;;  %vm399_vm1 = vcmp.eq.s32.totalorder %v1133_v32, 127 }
  0x4c   :  { %v329_v6 = vadd.f32 %v328_v0, %v319_v63  ;;  %v338_v7 = vmul.f32 %v337_v5, %v331_v59  ;;  %v343_v8 = vstv %s935_s12  ;;  %vm400_vm2 = vcmp.eq.s32.totalorder %v1136_v34, 127 }
  0x4d   :  { %v335_v10 = vadd.f32 %v334_v4, %v325_v3  ;;  %v344_v11 = vmul.f32 %v343_v8, %v341_v2  ;;  %v347_v12 = vstv %s936_s13  ;;  %vm414_vm4 = vcmp.lt.s32.totalorder %v1133_v32, 1 }
  0x4e   :  { %v339_v13 = vadd.f32 %v338_v7, %v329_v6  ;;  %v348_v14 = vmul.f32 %v347_v12, %v341_v2  ;;  %v353_v15 = vstv %s937_s14  ;;  %vm397_vm5 = vcmp.eq.s32.totalorder %v1133_v32, 0 }
  0x4f   :  { %v345_v17 = vadd.f32 %v344_v11, %v335_v10  ;;  %v354_v18 = vmul.f32 %v353_v15, %v351_v9  ;;  %v357_v19 = vstv %s938_s15  ;;  %vm398_vm6 = vcmp.eq.s32.totalorder %v1136_v34, 0 }
  0x50   :  { %v349_v20 = vadd.f32 %v348_v14, %v339_v13  ;;  %v358_v21 = vmul.f32 %v357_v19, %v351_v9  ;;  %v363_v22 = vstv %s939_s16  ;;  %v1087_v0 = vmov 0   ;;  %v404_v14 = vld [vmem:[%s1386_s3] sm:$0xff] }
  0x51   :  { %v355_v23 = vadd.f32 %v354_v18, %v345_v17  ;;  %v364_v24 = vmul.f32 %v363_v22, %v361_v16  ;;  %v367_v25 = vstv %s940_s17  ;;  %997 = vset.pattern.permute.xlu2 %v1087_v0  ;;  %1008 = vset.pattern.permute.xlu1 %v1087_v0  ;;  %v407_v19 = vld [vmem:[%s1387_s4] sm:$0xff] }
  0x52   :  { %v359_v26 = vadd.f32 %v358_v21, %v349_v20  ;;  %v368_v27 = vmul.f32 %v367_v25, %v361_v16  ;;  %1019 = vset.pattern.permute.xlu0 %v1087_v0 }
  0x53   :  { %v365_v28 = vadd.f32 %v364_v24, %v355_v23 }
  0x54   :  { %v369_v29 = vadd.f32 %v368_v27, %v359_v26 }
  0x56   :  { %v987_v30 = vpack.i.bf16 %v369_v29, %v365_v28 }
  0x58   :  { %988 = vrot.lane.b32.xlu0 %v987_v30, %s1085_s18 }
  0x60   :  { %993 = vrot.lane.b32.xlu0 %v987_v30, %s1086_s19 }
  0xca   :  { %v989_v35 = vpop.permute.xlu0 %988 }
  0xcb   :  { %v991_v36 = vunpack.i.h.bf16 %v989_v35  ;;  %v990_v37 = vunpack.i.l.bf16 %v989_v35 }
  0xcd   :  { %v424_v38 = vsel %vm423_vm0, %v990_v37, %v991_v36  ;;  %v425_v39 = vsel %vm423_vm0, %v991_v36, %v990_v37 }
  0xce   :  { %v426_v40 = vsel %vm399_vm1, %v425_v39, %v424_v38  ;;  %v427_v41 = vsel %vm400_vm2, %v424_v38, %v425_v39 }
  0xcf   :  { %v430_v42 = vpack.c.bf16 %v426_v40, %v426_v40  ;;  %v431_v43 = vpack.c.bf16 %v427_v41, %v427_v41 }
  0xd1   :  { %v438_v44 = vsel %vm436_vm3, %v430_v42, 0  ;;  %v441_v45 = vsel %vm436_vm3, %v431_v43, 0 }
  0xd2   :  { %v994_v46 = vpop.permute.xlu0 %993  ;;  %449 = vmatpush.bf16.msra.mxu0 %v438_v44  ;;  %462 = vmatpush.bf16.msra.mxu1 %v441_v45 }
  0xd3   :  { %v996_v47 = vunpack.i.h.bf16 %v994_v46  ;;  %v995_v48 = vunpack.i.l.bf16 %v994_v46 }
  0xd5   :  { %v415_v49 = vsel %vm414_vm4, %v995_v48, %v996_v47  ;;  %v416_v50 = vsel %vm414_vm4, %v996_v47, %v995_v48 }
  0xd6   :  { %v417_v51 = vsel %vm397_vm5, %v415_v49, %v416_v50  ;;  %v418_v52 = vsel %vm398_vm6, %v416_v50, %v415_v49 }
  0xd7   :  { %v428_v53 = vpack.c.bf16 %v365_v28, %v417_v51  ;;  %v429_v54 = vpack.c.bf16 %v369_v29, %v418_v52  ;;  %v402_v52 = vld [vmem:[%s1385_s2 + $0x4] sm:$0xf] }
  0xd9   :  { %450 = vmatpush.bf16.msra.mxu0 %v428_v53  ;;  %463 = vmatpush.bf16.msra.mxu1 %v429_v54 }
  0xdc   :  { %941 = vmatmul.msk.bf16.vlgmr.msra.gmra.mxu0 %vm432_vm7, %v401_v55  ;;  %942 = vmatmul.msk.bf16.vlgmr.msra.gmra.mxu1 %vm432_vm7, %v401_v55 }
 0x159   :  { %v452_v56 = vpop.f32.mrf.mxu0  ;;  %v465_v57 = vpop.f32.mrf.mxu1 }
 0x15a   :  { %v469_v58 = vadd.f32 %v465_v57, %v452_v56  ;;  %v472_v59 = vmul.f32 %v452_v56, %v452_v56  ;;  %v473_v60 = vmul.f32 %v465_v57, %v465_v57 }
 0x15c   :  { %470 = vadd.xlane.f32.xlu1 %v469_v58  ;;  %v474_v63 = vadd.f32 %v473_v60, %v472_v59 }
 0x161   :  { %v454_v61 = vpop.f32.mrf.mxu0  ;;  %v467_v62 = vpop.f32.mrf.mxu1 }
 0x164   :  { %475 = vadd.xlane.f32.xlu1 %v474_v63 }
 0x1cf   :  { %v471_v1 = vpop.xlane.xlu1 %470 }
 0x1d0   :  { %v477_v2 = vmul.f32 0.00390625, %v471_v1 }
 0x1d2   :  { %v479_v4 = vmul.f32 %v477_v2, %v477_v2 }
 0x1d7   :  { %v476_v3 = vpop.xlane.xlu1 %475 }
 0x1d8   :  { %v478_v5 = vmul.f32 0.00390625, %v476_v3 }
 0x1da   :  { %v480_v6 = vsub.f32 %v478_v5, %v479_v4 }
 0x1dc   :  { %v481_v7 = vmax.f32 %v480_v6, 0.0 }
 0x1de   :  { %v482_v8 = vadd.f32 1e-05, %v481_v7 }
 0x1e0   :  { %1035 = vrsqrt.f32 %v482_v8  ;;  %vm489_vm9 = vweird.f32 %v482_v8 }
 0x1e6   :  { %v1036_v9 = vpop.eup %1035 }
 0x1e7   :  { %v484_v10 = vmul.f32 %v1036_v9, %v482_v8  ;;  %vm490_vm8 = vweird.f32 %v1036_v9 }
 0x1e8   :  { %vm491_vm10 = vmor %vm489_vm9, %vm490_vm8  ;;  %vm712_vm8 = vcmp.lt.s32.totalorder %v1133_v32, 126  ;;  %vm716_vm9 = vcmp.lt.s32.totalorder %v1136_v34, 126 }
 0x1e9   :  { %v485_v11 = vmul.f32 %v1036_v9, %v484_v10  ;;  %v405_v10 = vld [vmem:[%s1386_s3 + $0x8] sm:$0xff] }
 0x1eb   :  { %v486_v12 = vmul.f32 0.5, %v485_v11 }
 0x1ed   :  { %v487_v13 = vsub.f32 1.5, %v486_v12 }
 0x1ef   :  { %v488_v15 = vmul.f32 %v1036_v9, %v487_v13 }
 0x1f1   :  { %v492_v16 = vsel %vm491_vm10, %v1036_v9, %v488_v15  ;;  %v408_v15 = vld [vmem:[%s1387_s4 + $0x8] sm:$0xff]  ;;  %vm726_vm10 = vcmp.lt.s32.totalorder %v1136_v34, 127 }
 0x1f2   :  { %v493_v17 = vmul.f32 %v492_v16, %v404_v14 }
 0x1f4   :  { %498 = vperm.xlu2 %997, %v493_v17   ;;  %v494_v18 = vmul.f32 %v493_v17, %v477_v2 }
 0x1f6   :  { %v495_v20 = vsub.f32 %v407_v19, %v494_v18 }
 0x1fc   :  { %505 = vperm.xlu2 %997, %v495_v20  }
 0x24e   :  { %v499_v21 = vpop.permute.xlu2 %498 }
 0x24f   :  { %v501_v22 = vmul.f32 %v499_v21, %v452_v56  ;;  %v502_v23 = vmul.f32 %v499_v21, %v465_v57 }
 0x256   :  { %v506_v24 = vpop.permute.xlu2 %505 }
 0x257   :  { %v508_v25 = vadd.f32 %v506_v24, %v501_v22  ;;  %v509_v26 = vadd.f32 %v506_v24, %v502_v23 }
 0x259   :  { %v510_v27 = vmax.f32 %v508_v25, 0.0  ;;  %v511_v28 = vmax.f32 %v509_v26, 0.0 }
 0x25b   :  { %v1003_v29 = vpack.i.bf16 %v511_v28, %v510_v27 }
 0x25d   :  { %1004 = vrot.lane.b32.xlu1 %v1003_v29, %s1086_s19  ;;  %999 = vrot.lane.b32.xlu0 %v1003_v29, %s1085_s18 }
 0x2cf   :  { %v1005_v30 = vpop.permute.xlu1 %1004  ;;  %v1000_v31 = vpop.permute.xlu0 %999 }
 0x2d0   :  { %v1007_v33 = vunpack.i.h.bf16 %v1005_v30  ;;  %v1006_v35 = vunpack.i.l.bf16 %v1005_v30  ;;  %v1002_v36 = vunpack.i.h.bf16 %v1000_v31  ;;  %v1001_v37 = vunpack.i.l.bf16 %v1000_v31 }
 0x2d2   :  { %v524_v38 = vsel %vm423_vm0, %v1001_v37, %v1002_v36  ;;  %v525_v39 = vsel %vm423_vm0, %v1002_v36, %v1001_v37  ;;  %v516_v42 = vsel %vm414_vm4, %v1006_v35, %v1007_v33  ;;  %v517_v43 = vsel %vm414_vm4, %v1007_v33, %v1006_v35 }
 0x2d3   :  { %v526_v40 = vsel %vm399_vm1, %v525_v39, %v524_v38  ;;  %v527_v41 = vsel %vm400_vm2, %v524_v38, %v525_v39  ;;  %v518_v48 = vsel %vm397_vm5, %v516_v42, %v517_v43  ;;  %v519_v49 = vsel %vm398_vm6, %v517_v43, %v516_v42 }
 0x2d4   :  { %v530_v44 = vpack.c.bf16 %v526_v40, %v526_v40  ;;  %v531_v45 = vpack.c.bf16 %v527_v41, %v527_v41  ;;  %v528_v50 = vpack.c.bf16 %v510_v27, %v518_v48  ;;  %v529_v51 = vpack.c.bf16 %v511_v28, %v519_v49  ;;  %v403_v48 = vld [vmem:[%s1385_s2 + $0x8] sm:$0xf] }
 0x2d6   :  { %v536_v46 = vsel %vm436_vm3, %v530_v44, 0  ;;  %v539_v47 = vsel %vm436_vm3, %v531_v45, 0 }
 0x2d7   :  { %547 = vmatpush.bf16.msra.mxu2 %v536_v46  ;;  %560 = vmatpush.bf16.msra.mxu3 %v539_v47 }
 0x2db   :  { %548 = vmatpush.bf16.msra.mxu2 %v528_v50  ;;  %561 = vmatpush.bf16.msra.mxu3 %v529_v51 }
 0x2de   :  { %943 = vmatmul.msk.bf16.vlgmr.msra.gmra.mxu2 %vm432_vm7, %v402_v52  ;;  %944 = vmatmul.msk.bf16.vlgmr.msra.gmra.mxu3 %vm432_vm7, %v402_v52 }
 0x361   :  { %v550_v53 = vpop.f32.mrf.mxu2  ;;  %v563_v54 = vpop.f32.mrf.mxu3 }
 0x362   :  { %v567_v55 = vadd.f32 %v563_v54, %v550_v53  ;;  %v570_v56 = vmul.f32 %v550_v53, %v550_v53  ;;  %v571_v57 = vmul.f32 %v563_v54, %v563_v54 }
 0x364   :  { %568 = vadd.xlane.f32.xlu2 %v567_v55  ;;  %v572_v58 = vadd.f32 %v571_v57, %v570_v56 }
 0x366   :  { %573 = vadd.xlane.f32.xlu0 %v572_v58 }
 0x369   :  { %v552_v59 = vpop.f32.mrf.mxu2  ;;  %v565_v60 = vpop.f32.mrf.mxu3 }
 0x3d7   :  { %v569_v61 = vpop.xlane.xlu2 %568 }
 0x3d8   :  { %v575_v62 = vmul.f32 0.00390625, %v569_v61 }
 0x3d9   :  { %v574_v63 = vpop.xlane.xlu0 %573 }
 0x3da   :  { %v577_v0 = vmul.f32 %v575_v62, %v575_v62  ;;  %v576_v1 = vmul.f32 0.00390625, %v574_v63 }
 0x3dc   :  { %v578_v2 = vsub.f32 %v576_v1, %v577_v0 }
 0x3de   :  { %v579_v3 = vmax.f32 %v578_v2, 0.0 }
 0x3e0   :  { %v580_v4 = vadd.f32 1e-05, %v579_v3 }
 0x3e2   :  { %1037 = vrsqrt.f32 %v580_v4  ;;  %vm587_vm12 = vweird.f32 %v580_v4 }
 0x3e8   :  { %v1038_v5 = vpop.eup %1037 }
 0x3e9   :  { %v582_v6 = vmul.f32 %v1038_v5, %v580_v4  ;;  %vm588_vm11 = vweird.f32 %v1038_v5 }
 0x3ea   :  { %vm589_vm13 = vmor %vm587_vm12, %vm588_vm11  ;;  %vm744_vm12 = vcmask 261120  }
 0x3eb   :  { %v583_v7 = vmul.f32 %v1038_v5, %v582_v6  ;;  %v406_v6 = vld [vmem:[%s1386_s3 + $0x10] sm:$0xff]  ;;  %s1088_s3 = smov 126   ;;  %vm957_vm11 = vmpackc.low %vm726_vm10, %vm716_vm9 }
 0x3ed   :  { %v584_v8 = vmul.f32 0.5, %v583_v7 }
 0x3ef   :  { %v585_v9 = vsub.f32 1.5, %v584_v8 }
 0x3f1   :  { %v586_v11 = vmul.f32 %v1038_v5, %v585_v9 }
 0x3f3   :  { %v590_v12 = vsel %vm589_vm13, %v1038_v5, %v586_v11  ;;  %vm806_vm13 = vcmask 64512  }
 0x3f4   :  { %v591_v13 = vmul.f32 %v590_v12, %v405_v10  ;;  %v409_v10 = vld [vmem:[%s1387_s4 + $0x10] sm:$0xff] }
 0x3f6   :  { %596 = vperm.xlu1 %1008, %v591_v13   ;;  %v592_v14 = vmul.f32 %v591_v13, %v575_v62 }
 0x3f8   :  { %v593_v16 = vsub.f32 %v408_v15, %v592_v14 }
 0x3fe   :  { %603 = vperm.xlu1 %1008, %v593_v16  }
 0x468   :  { %v597_v17 = vpop.permute.xlu1 %596 }
 0x469   :  { %v599_v18 = vmul.f32 %v597_v17, %v550_v53  ;;  %v600_v19 = vmul.f32 %v597_v17, %v563_v54 }
 0x470   :  { %v604_v20 = vpop.permute.xlu1 %603 }
 0x471   :  { %v606_v21 = vadd.f32 %v604_v20, %v599_v18  ;;  %v607_v22 = vadd.f32 %v604_v20, %v600_v19 }
 0x473   :  { %v608_v23 = vmax.f32 %v606_v21, 0.0  ;;  %v609_v24 = vmax.f32 %v607_v22, 0.0 }
 0x475   :  { %v1014_v25 = vpack.i.bf16 %v609_v24, %v608_v23 }
 0x477   :  { %1015 = vrot.lane.b32.xlu2 %v1014_v25, %s1086_s19  ;;  %1010 = vrot.lane.b32.xlu1 %v1014_v25, %s1085_s18 }
 0x4d1   :  { %v1016_v26 = vpop.permute.xlu2 %1015 }
 0x4d2   :  { %v1018_v27 = vunpack.i.h.bf16 %v1016_v26  ;;  %v1017_v28 = vunpack.i.l.bf16 %v1016_v26 }
 0x4d4   :  { %v614_v38 = vsel %vm414_vm4, %v1017_v28, %v1018_v27  ;;  %v615_v39 = vsel %vm414_vm4, %v1018_v27, %v1017_v28 }
 0x4d5   :  { %v616_v44 = vsel %vm397_vm5, %v614_v38, %v615_v39  ;;  %v617_v45 = vsel %vm398_vm6, %v615_v39, %v614_v38  ;;  %vm1089_vm5 = vmmov 1  }
 0x4d6   :  { %v626_v46 = vpack.c.bf16 %v608_v23, %v616_v44  ;;  %v627_v47 = vpack.c.bf16 %v609_v24, %v617_v45 }
 0x4e9   :  { %v1011_v29 = vpop.permute.xlu1 %1010 }
 0x4ea   :  { %v1013_v30 = vunpack.i.h.bf16 %v1011_v29  ;;  %v1012_v31 = vunpack.i.l.bf16 %v1011_v29 }
 0x4ec   :  { %v622_v33 = vsel %vm423_vm0, %v1012_v31, %v1013_v30  ;;  %v623_v35 = vsel %vm423_vm0, %v1013_v30, %v1012_v31 }
 0x4ed   :  { %v624_v36 = vsel %vm399_vm1, %v623_v35, %v622_v33  ;;  %v625_v37 = vsel %vm400_vm2, %v622_v33, %v623_v35  ;;  %vm735_vm2 = vcmp.ge.s32.totalorder %v1133_v32, 1 }
 0x4ee   :  { %v628_v40 = vpack.c.bf16 %v624_v36, %v624_v36  ;;  %v629_v41 = vpack.c.bf16 %v625_v37, %v625_v37  ;;  %vm947_vm6 = vmpackc.low %vm735_vm2, %vm1089_vm5 }
 0x4f0   :  { %v634_v42 = vsel %vm436_vm3, %v628_v40, 0  ;;  %v637_v43 = vsel %vm436_vm3, %v629_v41, 0  ;;  %vm736_vm3 = vcmp.ge.s32.totalorder %v1136_v34, 1  ;;  %v743_v34 = vld [vmem:[%s1388_s5] sm:$0xf] }
 0x4f1   :  { %645 = vmatpush.bf16.msrb.mxu0 %v634_v42  ;;  %658 = vmatpush.bf16.msrb.mxu1 %v637_v43 }
 0x4f5   :  { %646 = vmatpush.bf16.msrb.mxu0 %v626_v46  ;;  %659 = vmatpush.bf16.msrb.mxu1 %v627_v47 }
 0x4f8   :  { %945 = vmatmul.msk.bf16.vlgmr.msrb.gmra.mxu0 %vm432_vm7, %v403_v48  ;;  %946 = vmatmul.msk.bf16.vlgmr.msrb.gmra.mxu1 %vm432_vm7, %v403_v48  ;;  %vm954_vm7 = vmpackc.low %vm736_vm3, %vm1089_vm5 }
 0x575   :  { %v648_v49 = vpop.f32.mrf.mxu0  ;;  %v661_v50 = vpop.f32.mrf.mxu1 }
 0x576   :  { %v665_v51 = vadd.f32 %v661_v50, %v648_v49  ;;  %v668_v52 = vmul.f32 %v648_v49, %v648_v49  ;;  %v669_v53 = vmul.f32 %v661_v50, %v661_v50 }
 0x578   :  { %666 = vadd.xlane.f32.xlu1 %v665_v51  ;;  %v670_v54 = vadd.f32 %v669_v53, %v668_v52 }
 0x57a   :  { %671 = vadd.xlane.f32.xlu0 %v670_v54 }
 0x57d   :  { %v650_v55 = vpop.f32.mrf.mxu0  ;;  %v663_v56 = vpop.f32.mrf.mxu1 }
 0x5eb   :  { %v667_v57 = vpop.xlane.xlu1 %666 }
 0x5ec   :  { %v673_v58 = vmul.f32 0.00390625, %v667_v57 }
 0x5ed   :  { %v672_v59 = vpop.xlane.xlu0 %671 }
 0x5ee   :  { %v675_v60 = vmul.f32 %v673_v58, %v673_v58  ;;  %v674_v61 = vmul.f32 0.00390625, %v672_v59 }
 0x5f0   :  { %v676_v62 = vsub.f32 %v674_v61, %v675_v60 }
 0x5f2   :  { %v677_v63 = vmax.f32 %v676_v62, 0.0 }
 0x5f4   :  { %v678_v0 = vadd.f32 1e-05, %v677_v63 }
 0x5f6   :  { %1039 = vrsqrt.f32 %v678_v0  ;;  %vm685_vm15 = vweird.f32 %v678_v0 }
 0x5fc   :  { %v1040_v1 = vpop.eup %1039 }
 0x5fd   :  { %v680_v2 = vmul.f32 %v1040_v1, %v678_v0  ;;  %vm686_vm14 = vweird.f32 %v1040_v1 }
 0x5fe   :  { %vm687_vm1 = vmor %vm685_vm15, %vm686_vm14 }
 0x5ff   :  { %v681_v3 = vmul.f32 %v1040_v1, %v680_v2 }
 0x601   :  { %v682_v4 = vmul.f32 0.5, %v681_v3 }
 0x603   :  { %v683_v5 = vsub.f32 1.5, %v682_v4 }
 0x605   :  { %v684_v7 = vmul.f32 %v1040_v1, %v683_v5 }
 0x607   :  { %v688_v8 = vsel %vm687_vm1, %v1040_v1, %v684_v7 }
 0x608   :  { %v689_v9 = vmul.f32 %v688_v8, %v406_v6 }
 0x60a   :  { %694 = vperm.xlu0 %1019, %v689_v9   ;;  %v690_v11 = vmul.f32 %v689_v9, %v673_v58 }
 0x60c   :  { %v691_v12 = vsub.f32 %v409_v10, %v690_v11 }
 0x60e   :  { %701 = vperm.xlu2 %997, %v691_v12  }
 0x668   :  { %v702_v16 = vpop.permute.xlu2 %701 }
 0x67c   :  { %v695_v13 = vpop.permute.xlu0 %694 }
 0x67d   :  { %v697_v14 = vmul.f32 %v695_v13, %v648_v49  ;;  %v698_v15 = vmul.f32 %v695_v13, %v661_v50 }
 0x67f   :  { %v704_v17 = vadd.f32 %v702_v16, %v697_v14  ;;  %v705_v18 = vadd.f32 %v702_v16, %v698_v15 }
 0x681   :  { %v706_v19 = vmax.f32 %v704_v17, 0.0  ;;  %v707_v20 = vmax.f32 %v705_v18, 0.0 }
 0x683   :  { %v1020_v21 = vpack.i.bf16 %v707_v20, %v706_v19 }
 0x685   :  { %1021 = vrot.lane.b32.xlu2 %v1020_v21, %s1086_s19 }
 0x68d   :  { %1026 = vrot.lane.b32.xlu2 %v1020_v21, %s1088_s3 }
 0x695   :  { %1031 = vrot.lane.b32.xlu2 %v1020_v21, %s1085_s18 }
 0x6df   :  { %v1022_v22 = vpop.permute.xlu2 %1021 }
 0x6e0   :  { %v1024_v23 = vunpack.i.h.bf16 %v1022_v22  ;;  %v1023_v24 = vunpack.i.l.bf16 %v1022_v22 }
 0x6e2   :  { %v734_v25 = vsel %vm414_vm4, %v1024_v23, %v1023_v24  ;;  %v733_v26 = vsel %vm414_vm4, %v1023_v24, %v1024_v23  ;;  %vm950_vm4 = vmpackc.low %vm423_vm0, %vm712_vm8 }
 0x6e3   :  { %v948_v27 = vpack.c.bf16 %v734_v25, %v706_v19  ;;  %v955_v28 = vpack.c.bf16 %v733_v26, %v707_v20 }
 0x6e5   :  { %949 = vmatpush.bf16.msk.msrb.mxu2 %vm947_vm6, %v948_v27  ;;  %956 = vmatpush.bf16.msk.msrb.mxu3 %vm954_vm7, %v955_v28 }
 0x6e7   :  { %v1027_v29 = vpop.permute.xlu2 %1026 }
 0x6e8   :  { %v1029_v30 = vunpack.i.h.bf16 %v1027_v29  ;;  %v1028_v31 = vunpack.i.l.bf16 %v1027_v29 }
 0x6ea   :  { %v713_v37 = vsel %vm712_vm8, %v1028_v31, %v1029_v30  ;;  %v714_v39 = vsel %vm712_vm8, %v1029_v30, %v1028_v31 }
 0x6ef   :  { %v1032_v33 = vpop.permute.xlu2 %1031 }
 0x6f0   :  { %v1034_v35 = vunpack.i.h.bf16 %v1032_v33  ;;  %v1033_v36 = vunpack.i.l.bf16 %v1032_v33 }
 0x6f2   :  { %v723_v38 = vsel %vm423_vm0, %v1033_v36, %v1034_v35  ;;  %v724_v40 = vsel %vm423_vm0, %v1034_v35, %v1033_v36 }
 0x6f3   :  { %v951_v41 = vpack.c.bf16 %v723_v38, %v713_v37  ;;  %v958_v42 = vpack.c.bf16 %v724_v40, %v714_v39 }
 0x6f5   :  { %952 = vmatpush.bf16.msk.msrb.mxu2 %vm950_vm4, %v951_v41  ;;  %959 = vmatpush.bf16.msk.msrb.mxu3 %vm957_vm11, %v958_v42 }
 0x6f8   :  { %953 = vmatmul.msk.bf16.vlgmr.msrb.gmra.mxu2 %vm744_vm12, %v743_v34  ;;  %960 = vmatmul.msk.bf16.vlgmr.msrb.gmra.mxu3 %vm744_vm12, %v743_v34 }
 0x77b   :  { %v757_v43 = vpop.f32.mrf.mxu2  ;;  %v770_v44 = vpop.f32.mrf.mxu3 }
 0x77c   :  { %774 = vxpose.xlu1.b32.start.end [1/1] (short) %v757_v43, 128  ;;  %823 = vxpose.xlu2.b32.start.end [1/1] (short) %v770_v44, 128 }
 0x783   :  { %v759_v45 = vpop.f32.mrf.mxu2  ;;  %v772_v46 = vpop.f32.mrf.mxu3 }
 0x815   :  { %v839_v32 = vpop.trf.xlu2 }
 0x816   :  { %961 = vst.msk [vmem:[%s1389_s6 + $0x80] sm:$0xff] %vm806_vm13, %v839_v32 }
 0x81d   :  { %v840_v47 = vpop.trf.xlu2 }
 0x81e   :  { %962 = vst.msk [vmem:[%s1389_s6 + $0x88] sm:$0xff] %vm806_vm13, %v840_v47 }
 0x820   :  { %v790_v48 = vpop.trf.xlu1 }
 0x821   :  { %807 = vst.msk [vmem:[%s1389_s6] sm:$0xff] %vm806_vm13, %v790_v48 }
 0x825   :  { %v841_v49 = vpop.trf.xlu2 }
 0x826   :  { %963 = vst.msk [vmem:[%s1389_s6 + $0x90] sm:$0xff] %vm806_vm13, %v841_v49 }
 0x828   :  { %v791_v50 = vpop.trf.xlu1 }
 0x829   :  { %808 = vst.msk [vmem:[%s1389_s6 + $0x8] sm:$0xff] %vm806_vm13, %v791_v50 }
 0x82d   :  { %v842_v51 = vpop.trf.xlu2 }
 0x82e   :  { %964 = vst.msk [vmem:[%s1389_s6 + $0x98] sm:$0xff] %vm806_vm13, %v842_v51 }
 0x830   :  { %v792_v52 = vpop.trf.xlu1 }
 0x831   :  { %809 = vst.msk [vmem:[%s1389_s6 + $0x10] sm:$0xff] %vm806_vm13, %v792_v52 }
 0x835   :  { %v843_v53 = vpop.trf.xlu2 }
 0x836   :  { %965 = vst.msk [vmem:[%s1389_s6 + $0xa0] sm:$0xff] %vm806_vm13, %v843_v53 }
 0x838   :  { %v793_v54 = vpop.trf.xlu1 }
 0x839   :  { %810 = vst.msk [vmem:[%s1389_s6 + $0x18] sm:$0xff] %vm806_vm13, %v793_v54 }
 0x83d   :  { %v844_v55 = vpop.trf.xlu2 }
 0x83e   :  { %966 = vst.msk [vmem:[%s1389_s6 + $0xa8] sm:$0xff] %vm806_vm13, %v844_v55 }
 0x840   :  { %v794_v56 = vpop.trf.xlu1 }
 0x841   :  { %811 = vst.msk [vmem:[%s1389_s6 + $0x20] sm:$0xff] %vm806_vm13, %v794_v56 }
 0x845   :  { %v845_v57 = vpop.trf.xlu2 }
 0x846   :  { %967 = vst.msk [vmem:[%s1389_s6 + $0xb0] sm:$0xff] %vm806_vm13, %v845_v57 }
 0x848   :  { %v795_v58 = vpop.trf.xlu1 }
 0x849   :  { %812 = vst.msk [vmem:[%s1389_s6 + $0x28] sm:$0xff] %vm806_vm13, %v795_v58 }
 0x84d   :  { %v846_v59 = vpop.trf.xlu2 }
 0x84e   :  { %968 = vst.msk [vmem:[%s1389_s6 + $0xb8] sm:$0xff] %vm806_vm13, %v846_v59 }
 0x850   :  { %v796_v60 = vpop.trf.xlu1 }
 0x851   :  { %813 = vst.msk [vmem:[%s1389_s6 + $0x30] sm:$0xff] %vm806_vm13, %v796_v60 }
 0x855   :  { %v847_v61 = vpop.trf.xlu2 }
 0x856   :  { %969 = vst.msk [vmem:[%s1389_s6 + $0xc0] sm:$0xff] %vm806_vm13, %v847_v61 }
 0x858   :  { %v797_v62 = vpop.trf.xlu1 }
 0x859   :  { %814 = vst.msk [vmem:[%s1389_s6 + $0x38] sm:$0xff] %vm806_vm13, %v797_v62 }
 0x85d   :  { %v848_v63 = vpop.trf.xlu2 }
 0x85e   :  { %970 = vst.msk [vmem:[%s1389_s6 + $0xc8] sm:$0xff] %vm806_vm13, %v848_v63 }
 0x860   :  { %v798_v0 = vpop.trf.xlu1 }
 0x861   :  { %815 = vst.msk [vmem:[%s1389_s6 + $0x40] sm:$0xff] %vm806_vm13, %v798_v0 }
 0x865   :  { %v849_v1 = vpop.trf.xlu2 }
 0x866   :  { %971 = vst.msk [vmem:[%s1389_s6 + $0xd0] sm:$0xff] %vm806_vm13, %v849_v1 }
 0x868   :  { %v799_v2 = vpop.trf.xlu1 }
 0x869   :  { %816 = vst.msk [vmem:[%s1389_s6 + $0x48] sm:$0xff] %vm806_vm13, %v799_v2 }
 0x86d   :  { %v850_v3 = vpop.trf.xlu2 }
 0x86e   :  { %972 = vst.msk [vmem:[%s1389_s6 + $0xd8] sm:$0xff] %vm806_vm13, %v850_v3 }
 0x870   :  { %v800_v4 = vpop.trf.xlu1 }
 0x871   :  { %817 = vst.msk [vmem:[%s1389_s6 + $0x50] sm:$0xff] %vm806_vm13, %v800_v4 }
 0x875   :  { %v851_v5 = vpop.trf.xlu2 }
 0x876   :  { %973 = vst.msk [vmem:[%s1389_s6 + $0xe0] sm:$0xff] %vm806_vm13, %v851_v5 }
 0x878   :  { %v801_v6 = vpop.trf.xlu1 }
 0x879   :  { %818 = vst.msk [vmem:[%s1389_s6 + $0x58] sm:$0xff] %vm806_vm13, %v801_v6 }
 0x87d   :  { %v852_v7 = vpop.trf.xlu2 }
 0x87e   :  { %974 = vst.msk [vmem:[%s1389_s6 + $0xe8] sm:$0xff] %vm806_vm13, %v852_v7 }
 0x880   :  { %v802_v8 = vpop.trf.xlu1 }
 0x881   :  { %819 = vst.msk [vmem:[%s1389_s6 + $0x60] sm:$0xff] %vm806_vm13, %v802_v8 }
 0x885   :  { %v853_v9 = vpop.trf.xlu2 }
 0x886   :  { %975 = vst.msk [vmem:[%s1389_s6 + $0xf0] sm:$0xff] %vm806_vm13, %v853_v9 }
 0x888   :  { %v803_v10 = vpop.trf.xlu1 }
 0x889   :  { %820 = vst.msk [vmem:[%s1389_s6 + $0x68] sm:$0xff] %vm806_vm13, %v803_v10 }
 0x88d   :  { %v854_v11 = vpop.trf.xlu2 }
 0x88e   :  { %976 = vst.msk [vmem:[%s1389_s6 + $0xf8] sm:$0xff] %vm806_vm13, %v854_v11 }
 0x890   :  { %v804_v12 = vpop.trf.xlu1 }
 0x891   :  { %821 = vst.msk [vmem:[%s1389_s6 + $0x70] sm:$0xff] %vm806_vm13, %v804_v12 }
 0x898   :  { %v805_v13 = vpop.trf.xlu1 }
 0x899   :  { %822 = vst.msk [vmem:[%s1389_s6 + $0x78] sm:$0xff] %vm806_vm13, %v805_v13 }
 0x89a   :  { %876 = vsyncpa [#allocation3], 1 }
 0x89b   :  { %877 = vsyncpa [#allocation4], 1 }

</bundles_post_ra>
